<compile_context>
chip_gen: v7x
topology: tpu7x:2x2x1
jax: 0.10.0
libtpu: 0.0.40
codegen_flags: <defaults>
</compile_context>

<pallas_src>
import numpy as np
import jax
import jax.numpy as jnp
from jax.experimental import pallas as pl
from jax.experimental.pallas import tpu as pltpu


# ----------------------------------------------------------------------------
# Host-side helpers.
# ----------------------------------------------------------------------------
def _round_up(x, m):
    return ((x + m - 1) // m) * m


def _bilinear_matrix(in_size, out_size):
    """(out_size, in_size) 1-D interpolation matrix matching
    F.interpolate(mode='bilinear', align_corners=False) along one axis."""
    dst = np.arange(out_size, dtype=np.float64)
    src = (dst + 0.5) * (in_size / out_size) - 0.5
    src = np.maximum(src, 0.0)                       # PyTorch clamps negative coords
    i0 = np.minimum(np.floor(src).astype(np.int64), in_size - 1)
    i1 = np.minimum(i0 + 1, in_size - 1)
    w1 = src - i0
    w0 = 1.0 - w1
    mat = np.zeros((out_size, in_size), dtype=np.float64)
    np.add.at(mat, (np.arange(out_size), i0), w0)
    np.add.at(mat, (np.arange(out_size), i1), w1)
    return mat


def _vmem_limit_bytes():
    """Generation-aware VMEM limit: ~3/4 of physical VMEM (96 MiB on v5e/v6e,
    48 MiB on v7x).  Falls back to 96 MiB if the query is unavailable."""
    cap = 128 * 1024 * 1024
    try:
        info = pltpu.get_tpu_info()
        cap = int(getattr(info, "vmem_capacity_bytes", cap)) or cap
    except Exception:
        pass
    return (cap * 3) // 4


def _pick_row_tile(T, K, Kr, N, C, P, budget_bytes):
    """Largest output-row tile Tr (multiple of 8, divides T) whose double-buffered
    working set fits the VMEM budget; falls back to the full T."""
    f32 = 4
    fixed = f32 * (2 * N * C          # features block (double-buffered)
                   + 2 * Kr * C       # probe weight (resident)
                   + 2 * Kr           # bias
                   + 2 * P * T        # column-interp matrix (resident)
                   + Kr * P * T)      # stage-A scratch (single buffer)
    per_row = f32 * (2 * K * T + 2 * P)   # output block rows + row-interp tile rows
    cap = max((budget_bytes - fixed) // max(per_row, 1), 8)
    best = None
    for t in range(8, T + 1, 8):
        if T % t == 0 and t <= cap:
            best = t
    return best if best is not None else T


# ----------------------------------------------------------------------------
# Fused kernel: linear probe + class-major layout + separable bilinear upsample.
# ----------------------------------------------------------------------------
def _make_kernel(num_classes, patches_per_side, cache_stage_a):
    K = int(num_classes)
    P = int(patches_per_side)

    def kernel(x_ref, w_ref, b_ref, wct_ref, wr_ref, o_ref, a_ref):
        # x_ref:   (1, N, C)     token features of one image
        # w_ref:   (Kr, C)       probe weight, classes padded to a multiple of 8
        # b_ref:   (Kr, 1)       probe bias
        # wct_ref: (P, T)        column interpolation matrix, transposed (resident)
        # wr_ref:  (Tr, P)       row tile of the row interpolation matrix
        # o_ref:   (1, K, Tr, T) output tile (class-major NCHW rows, lane-dense in T)
        # a_ref:   (Kr, P, T)    VMEM scratch: column-resized class-major maps

        def stage_a():
            # Class-major logits with no transpose: contract the C axis of both
            # operands on the MXU -> (Kr, N).
            lg = jax.lax.dot_general(
                w_ref[...], x_ref[0],
                dimension_numbers=(((1,), (1,)), ((), ())),
                preferred_element_type=jnp.float32,
            ) + b_ref[...]
            # Column resize, one image row p1 at a time (cold path, once per image).
            for p1 in range(P):
                row = lg[:, p1 * P:(p1 + 1) * P]                         # (Kr, P)
                a_ref[:, p1, :] = jnp.dot(
                    row, wct_ref[...], preferred_element_type=jnp.float32)  # (Kr, T)

        if cache_stage_a:
            # Row-tile axis is the innermost sequential ("arbitrary") axis, so the
            # scratch filled at j == 0 is valid for every row tile of this image.
            pl.when(pl.program_id(1) == 0)(stage_a)
        else:
            # B == 1 path: recompute the cheap stage A per tile so the row axis
            # can be "parallel" (2-TensorCore utilization on v7x).
            stage_a()

        # Stage B: row resize.  One MXU matmul per real class, reading contiguous
        # (P, T) scratch slabs and writing (Tr, T) lane-dense output slabs directly.
        wr = wr_ref[...]                                                 # (Tr, P)
        for k in range(K):
            o_ref[0, k] = jnp.dot(
                wr, a_ref[k], preferred_element_type=jnp.float32)        # (Tr, T)

    return kernel


# ----------------------------------------------------------------------------
# Module-equivalent wrapper.
# ----------------------------------------------------------------------------
def linear_segmentation_probe(features, weight, bias, num_classes, target_size):
    """features: (B, N, C); weight: (num_classes, C); bias: (num_classes,)
    returns (B, num_classes, target_size, target_size) float32 (NCHW)."""
    B, N, C = features.shape
    P = int(round(np.sqrt(N)))
    if P * P != N:
        # TODO(synk): non-square token grids (e.g. with a CLS token) are unsupported.
        raise ValueError(f"token count N={N} is not a perfect square")

    K = int(num_classes)
    T = int(target_size)
    Kr = _round_up(max(K, 1), 8)          # sublane-aligned class rows (not 128)

    feats = features.astype(jnp.float32)
    w_pad = jnp.zeros((Kr, C), jnp.float32).at[:K, :].set(
        jnp.asarray(weight, jnp.float32))
    b_pad = jnp.zeros((Kr, 1), jnp.float32).at[:K, 0].set(
        jnp.asarray(bias, jnp.float32))

    interp = _bilinear_matrix(P, T)                       # (T, P) float64
    wr = jnp.asarray(interp, jnp.float32)                 # row interp (T, P), tiled
    wct = jnp.asarray(interp.T, jnp.float32)              # column interp^T (P, T)

    vmem_limit = int(_vmem_limit_bytes())
    tile_budget = (vmem_limit * 17) // 20                 # ~85% of the limit
    Tr = _pick_row_tile(T, K, Kr, N, C, P, tile_budget)
    n_row = T // Tr if T % Tr == 0 else 1
    if T % Tr != 0:                                       # safety: full-dim block
        Tr = T
    cache_stage_a = B > 1

    kernel = _make_kernel(K, P, cache_stage_a)
    out = pl.pallas_call(
        kernel,
        out_shape=jax.ShapeDtypeStruct((B, K, T, T), jnp.float32),
        grid=(B, n_row),
        in_specs=[
            pl.BlockSpec((1, N, C), lambda b, j: (b, 0, 0)),    # features (per image)
            pl.BlockSpec((Kr, C), lambda b, j: (0, 0)),         # probe weight (resident)
            pl.BlockSpec((Kr, 1), lambda b, j: (0, 0)),         # bias (resident)
            pl.BlockSpec((P, T), lambda b, j: (0, 0)),          # column interp^T (resident)
            pl.BlockSpec((Tr, P), lambda b, j: (j, 0)),         # row interp tile
        ],
        out_specs=pl.BlockSpec((1, K, Tr, T), lambda b, j: (b, 0, j, 0)),
        scratch_shapes=[pltpu.VMEM((Kr, P, T), jnp.float32)],
        compiler_params=pltpu.CompilerParams(
            dimension_semantics=(("parallel", "arbitrary") if cache_stage_a
                                 else ("arbitrary", "parallel")),
            vmem_limit_bytes=vmem_limit,
        ),
    )(feats, w_pad, b_pad, wct, wr)
    return out


if __name__ == "__main__":
    # Small, module-consistent shapes: B=2 images, N=64 patch tokens (8x8 grid),
    # C=32 hidden, 21 classes, upsampled to 32x32.
    B, N, C = 2, 64, 32
    NUM_CLASSES = 21
    TARGET = 32
    P = 8

    key = jax.random.PRNGKey(0)
    k_feat, k_w, k_b = jax.random.split(key, 3)
    features = jax.random.normal(k_feat, (B, N, C), dtype=jnp.float32)
    weight = jax.random.normal(k_w, (NUM_CLASSES, C), dtype=jnp.float32) * 0.02
    bias = jax.random.normal(k_b, (NUM_CLASSES,), dtype=jnp.float32) * 0.01

    out = linear_segmentation_probe(features, weight, bias, NUM_CLASSES, TARGET)
    out = jax.block_until_ready(out)
    assert out.shape == (B, NUM_CLASSES, TARGET, TARGET), out.shape
    assert out.dtype == jnp.float32

    # Pure-JAX reference (separable bilinear) to validate the fused kernel path.
    wr32 = jnp.asarray(_bilinear_matrix(P, TARGET), jnp.float32)         # (T, P)
    logits_ref = features @ weight.T + bias                              # (B, N, K)
    maps_ref = jnp.transpose(logits_ref, (0, 2, 1)).reshape(B, NUM_CLASSES, P, P)
    up_ref = jnp.einsum("tp,bkpq,uq->bktu", wr32, maps_ref, wr32)
    max_err = float(jnp.max(jnp.abs(out - up_ref)))
    assert max_err < 1e-3, f"max abs error {max_err}"

    print("KERNEL_OK")
</pallas_src>

<mosaic_0001>
module attributes {stable_mosaic.version = 11 : i64} {
  func.func @kernel(%arg0: i32, %arg1: i32, %arg2: memref<1x64x32xf32, #tpu.memory_space<vmem>>, %arg3: memref<24x32xf32, #tpu.memory_space<vmem>>, %arg4: memref<24x1xf32, #tpu.memory_space<vmem>>, %arg5: memref<8x32xf32, #tpu.memory_space<vmem>>, %arg6: memref<32x8xf32, #tpu.memory_space<vmem>>, %arg7: memref<1x21x32x32xf32, #tpu.memory_space<vmem>>, %arg8: memref<24x8x32xf32, #tpu.memory_space<vmem>>) attributes {dimension_semantics = [#tpu.dimension_semantics<parallel>, #tpu.dimension_semantics<arbitrary>], iteration_bounds = array<i64: 2, 1>, scalar_prefetch = 0 : i64, scratch_operands = 1 : i64, tpu.core_type = #tpu.core_type<tc>, window_params = [{transform_indices = @transform_0, window_bounds = array<i64: 1, 64, 32>}, {pipeline_mode = #tpu.pipeline_mode<synchronous>, transform_indices = @transform_1, window_bounds = array<i64: 24, 32>}, {pipeline_mode = #tpu.pipeline_mode<synchronous>, transform_indices = @transform_2, window_bounds = array<i64: 24, 1>}, {pipeline_mode = #tpu.pipeline_mode<synchronous>, transform_indices = @transform_3, window_bounds = array<i64: 8, 32>}, {transform_indices = @transform_4, window_bounds = array<i64: 32, 8>}, {transform_indices = @transform_5, window_bounds = array<i64: 1, 21, 32, 32>}]} {
    %c0_i32 = arith.constant 0 : i32
    %0 = arith.cmpi eq, %arg1, %c0_i32 : i32
    %1 = arith.extui %0 : i1 to i32
    %c0_i32_0 = arith.constant 0 : i32
    %2 = arith.cmpi ne, %1, %c0_i32_0 : i32
    scf.if %2 {
      %c0_149 = arith.constant 0 : index
      %c0_150 = arith.constant 0 : index
      %130 = vector.load %arg3[%c0_149, %c0_150] : memref<24x32xf32, #tpu.memory_space<vmem>>, vector<24x32xf32>
      %c0_151 = arith.constant 0 : index
      %c0_152 = arith.constant 0 : index
      %c0_153 = arith.constant 0 : index
      %131 = vector.load %arg2[%c0_151, %c0_152, %c0_153] : memref<1x64x32xf32, #tpu.memory_space<vmem>>, vector<1x64x32xf32>
      %132 = vector.shape_cast %131 : vector<1x64x32xf32> to vector<64x32xf32>
      %cst_154 = arith.constant dense<0.000000e+00> : vector<24x64xf32>
      %133 = tpu.matmul %130, %132, %cst_154 {dimension_numbers = #tpu.dot_dimension_numbers<[1], [1], [0], [0], [0, 0, 1, 0], [], []>} : vector<24x32xf32>, vector<64x32xf32>, vector<24x64xf32> -> vector<24x64xf32>
      %c0_155 = arith.constant 0 : index
      %c0_156 = arith.constant 0 : index
      %134 = vector.load %arg4[%c0_155, %c0_156] : memref<24x1xf32, #tpu.memory_space<vmem>>, vector<24x1xf32>
      %135 = vector.broadcast %134 : vector<24x1xf32> to vector<24x64xf32>
      %136 = arith.addf %133, %135 : vector<24x64xf32>
      %137 = vector.extract_strided_slice %136 {offsets = [0, 0], sizes = [24, 8], strides = [1, 1]} : vector<24x64xf32> to vector<24x8xf32>
      %c0_157 = arith.constant 0 : index
      %c0_158 = arith.constant 0 : index
      %138 = vector.load %arg5[%c0_157, %c0_158] : memref<8x32xf32, #tpu.memory_space<vmem>>, vector<8x32xf32>
      %cst_159 = arith.constant dense<0.000000e+00> : vector<24x32xf32>
      %139 = tpu.matmul %137, %138, %cst_159 {dimension_numbers = #tpu.dot_dimension_numbers<[1], [0], [0], [1], [0, 0, 1, 1], [], []>} : vector<24x8xf32>, vector<8x32xf32>, vector<24x32xf32> -> vector<24x32xf32>
      %c0_160 = arith.constant 0 : index
      %c0_161 = arith.constant 0 : index
      %c0_162 = arith.constant 0 : index
      %140 = vector.load %arg8[%c0_160, %c0_161, %c0_162] : memref<24x8x32xf32, #tpu.memory_space<vmem>>, vector<24x1x32xf32>
      %141 = vector.shape_cast %140 : vector<24x1x32xf32> to vector<24x32xf32>
      %142 = vector.shape_cast %139 : vector<24x32xf32> to vector<24x1x32xf32>
      tpu.vector_store %arg8[%c0_160, %c0_161, %c0_162], %142 {strides = array<i32>} : memref<24x8x32xf32, #tpu.memory_space<vmem>>, vector<24x1x32xf32>,
      %143 = vector.extract_strided_slice %136 {offsets = [0, 8], sizes = [24, 8], strides = [1, 1]} : vector<24x64xf32> to vector<24x8xf32>
      %c0_163 = arith.constant 0 : index
      %c0_164 = arith.constant 0 : index
      %144 = vector.load %arg5[%c0_163, %c0_164] : memref<8x32xf32, #tpu.memory_space<vmem>>, vector<8x32xf32>
      %cst_165 = arith.constant dense<0.000000e+00> : vector<24x32xf32>
      %145 = tpu.matmul %143, %144, %cst_165 {dimension_numbers = #tpu.dot_dimension_numbers<[1], [0], [0], [1], [0, 0, 1, 1], [], []>} : vector<24x8xf32>, vector<8x32xf32>, vector<24x32xf32> -> vector<24x32xf32>
      %c0_166 = arith.constant 0 : index
      %c1_167 = arith.constant 1 : index
      %c0_168 = arith.constant 0 : index
      %146 = vector.load %arg8[%c0_166, %c1_167, %c0_168] : memref<24x8x32xf32, #tpu.memory_space<vmem>>, vector<24x1x32xf32>
      %147 = vector.shape_cast %146 : vector<24x1x32xf32> to vector<24x32xf32>
      %148 = vector.shape_cast %145 : vector<24x32xf32> to vector<24x1x32xf32>
      tpu.vector_store %arg8[%c0_166, %c1_167, %c0_168], %148 {strides = array<i32>} : memref<24x8x32xf32, #tpu.memory_space<vmem>>, vector<24x1x32xf32>,
      %149 = vector.extract_strided_slice %136 {offsets = [0, 16], sizes = [24, 8], strides = [1, 1]} : vector<24x64xf32> to vector<24x8xf32>
      %c0_169 = arith.constant 0 : index
      %c0_170 = arith.constant 0 : index
      %150 = vector.load %arg5[%c0_169, %c0_170] : memref<8x32xf32, #tpu.memory_space<vmem>>, vector<8x32xf32>
      %cst_171 = arith.constant dense<0.000000e+00> : vector<24x32xf32>
      %151 = tpu.matmul %149, %150, %cst_171 {dimension_numbers = #tpu.dot_dimension_numbers<[1], [0], [0], [1], [0, 0, 1, 1], [], []>} : vector<24x8xf32>, vector<8x32xf32>, vector<24x32xf32> -> vector<24x32xf32>
      %c0_172 = arith.constant 0 : index
      %c2_173 = arith.constant 2 : index
      %c0_174 = arith.constant 0 : index
      %152 = vector.load %arg8[%c0_172, %c2_173, %c0_174] : memref<24x8x32xf32, #tpu.memory_space<vmem>>, vector<24x1x32xf32>
      %153 = vector.shape_cast %152 : vector<24x1x32xf32> to vector<24x32xf32>
      %154 = vector.shape_cast %151 : vector<24x32xf32> to vector<24x1x32xf32>
      tpu.vector_store %arg8[%c0_172, %c2_173, %c0_174], %154 {strides = array<i32>} : memref<24x8x32xf32, #tpu.memory_space<vmem>>, vector<24x1x32xf32>,
      %155 = vector.extract_strided_slice %136 {offsets = [0, 24], sizes = [24, 8], strides = [1, 1]} : vector<24x64xf32> to vector<24x8xf32>
      %c0_175 = arith.constant 0 : index
      %c0_176 = arith.constant 0 : index
      %156 = vector.load %arg5[%c0_175, %c0_176] : memref<8x32xf32, #tpu.memory_space<vmem>>, vector<8x32xf32>
      %cst_177 = arith.constant dense<0.000000e+00> : vector<24x32xf32>
      %157 = tpu.matmul %155, %156, %cst_177 {dimension_numbers = #tpu.dot_dimension_numbers<[1], [0], [0], [1], [0, 0, 1, 1], [], []>} : vector<24x8xf32>, vector<8x32xf32>, vector<24x32xf32> -> vector<24x32xf32>
      %c0_178 = arith.constant 0 : index
      %c3_179 = arith.constant 3 : index
      %c0_180 = arith.constant 0 : index
      %158 = vector.load %arg8[%c0_178, %c3_179, %c0_180] : memref<24x8x32xf32, #tpu.memory_space<vmem>>, vector<24x1x32xf32>
      %159 = vector.shape_cast %158 : vector<24x1x32xf32> to vector<24x32xf32>
      %160 = vector.shape_cast %157 : vector<24x32xf32> to vector<24x1x32xf32>
      tpu.vector_store %arg8[%c0_178, %c3_179, %c0_180], %160 {strides = array<i32>} : memref<24x8x32xf32, #tpu.memory_space<vmem>>, vector<24x1x32xf32>,
      %161 = vector.extract_strided_slice %136 {offsets = [0, 32], sizes = [24, 8], strides = [1, 1]} : vector<24x64xf32> to vector<24x8xf32>
      %c0_181 = arith.constant 0 : index
      %c0_182 = arith.constant 0 : index
      %162 = vector.load %arg5[%c0_181, %c0_182] : memref<8x32xf32, #tpu.memory_space<vmem>>, vector<8x32xf32>
      %cst_183 = arith.constant dense<0.000000e+00> : vector<24x32xf32>
      %163 = tpu.matmul %161, %162, %cst_183 {dimension_numbers = #tpu.dot_dimension_numbers<[1], [0], [0], [1], [0, 0, 1, 1], [], []>} : vector<24x8xf32>, vector<8x32xf32>, vector<24x32xf32> -> vector<24x32xf32>
      %c0_184 = arith.constant 0 : index
      %c4_185 = arith.constant 4 : index
      %c0_186 = arith.constant 0 : index
      %164 = vector.load %arg8[%c0_184, %c4_185, %c0_186] : memref<24x8x32xf32, #tpu.memory_space<vmem>>, vector<24x1x32xf32>
      %165 = vector.shape_cast %164 : vector<24x1x32xf32> to vector<24x32xf32>
      %166 = vector.shape_cast %163 : vector<24x32xf32> to vector<24x1x32xf32>
      tpu.vector_store %arg8[%c0_184, %c4_185, %c0_186], %166 {strides = array<i32>} : memref<24x8x32xf32, #tpu.memory_space<vmem>>, vector<24x1x32xf32>,
      %167 = vector.extract_strided_slice %136 {offsets = [0, 40], sizes = [24, 8], strides = [1, 1]} : vector<24x64xf32> to vector<24x8xf32>
      %c0_187 = arith.constant 0 : index
      %c0_188 = arith.constant 0 : index
      %168 = vector.load %arg5[%c0_187, %c0_188] : memref<8x32xf32, #tpu.memory_space<vmem>>, vector<8x32xf32>
      %cst_189 = arith.constant dense<0.000000e+00> : vector<24x32xf32>
      %169 = tpu.matmul %167, %168, %cst_189 {dimension_numbers = #tpu.dot_dimension_numbers<[1], [0], [0], [1], [0, 0, 1, 1], [], []>} : vector<24x8xf32>, vector<8x32xf32>, vector<24x32xf32> -> vector<24x32xf32>
      %c0_190 = arith.constant 0 : index
      %c5_191 = arith.constant 5 : index
      %c0_192 = arith.constant 0 : index
      %170 = vector.load %arg8[%c0_190, %c5_191, %c0_192] : memref<24x8x32xf32, #tpu.memory_space<vmem>>, vector<24x1x32xf32>
      %171 = vector.shape_cast %170 : vector<24x1x32xf32> to vector<24x32xf32>
      %172 = vector.shape_cast %169 : vector<24x32xf32> to vector<24x1x32xf32>
      tpu.vector_store %arg8[%c0_190, %c5_191, %c0_192], %172 {strides = array<i32>} : memref<24x8x32xf32, #tpu.memory_space<vmem>>, vector<24x1x32xf32>,
      %173 = vector.extract_strided_slice %136 {offsets = [0, 48], sizes = [24, 8], strides = [1, 1]} : vector<24x64xf32> to vector<24x8xf32>
      %c0_193 = arith.constant 0 : index
      %c0_194 = arith.constant 0 : index
      %174 = vector.load %arg5[%c0_193, %c0_194] : memref<8x32xf32, #tpu.memory_space<vmem>>, vector<8x32xf32>
      %cst_195 = arith.constant dense<0.000000e+00> : vector<24x32xf32>
      %175 = tpu.matmul %173, %174, %cst_195 {dimension_numbers = #tpu.dot_dimension_numbers<[1], [0], [0], [1], [0, 0, 1, 1], [], []>} : vector<24x8xf32>, vector<8x32xf32>, vector<24x32xf32> -> vector<24x32xf32>
      %c0_196 = arith.constant 0 : index
      %c6_197 = arith.constant 6 : index
      %c0_198 = arith.constant 0 : index
      %176 = vector.load %arg8[%c0_196, %c6_197, %c0_198] : memref<24x8x32xf32, #tpu.memory_space<vmem>>, vector<24x1x32xf32>
      %177 = vector.shape_cast %176 : vector<24x1x32xf32> to vector<24x32xf32>
      %178 = vector.shape_cast %175 : vector<24x32xf32> to vector<24x1x32xf32>
      tpu.vector_store %arg8[%c0_196, %c6_197, %c0_198], %178 {strides = array<i32>} : memref<24x8x32xf32, #tpu.memory_space<vmem>>, vector<24x1x32xf32>,
      %179 = vector.extract_strided_slice %136 {offsets = [0, 56], sizes = [24, 8], strides = [1, 1]} : vector<24x64xf32> to vector<24x8xf32>
      %c0_199 = arith.constant 0 : index
      %c0_200 = arith.constant 0 : index
      %180 = vector.load %arg5[%c0_199, %c0_200] : memref<8x32xf32, #tpu.memory_space<vmem>>, vector<8x32xf32>
      %cst_201 = arith.constant dense<0.000000e+00> : vector<24x32xf32>
      %181 = tpu.matmul %179, %180, %cst_201 {dimension_numbers = #tpu.dot_dimension_numbers<[1], [0], [0], [1], [0, 0, 1, 1], [], []>} : vector<24x8xf32>, vector<8x32xf32>, vector<24x32xf32> -> vector<24x32xf32>
      %c0_202 = arith.constant 0 : index
      %c7_203 = arith.constant 7 : index
      %c0_204 = arith.constant 0 : index
      %182 = vector.load %arg8[%c0_202, %c7_203, %c0_204] : memref<24x8x32xf32, #tpu.memory_space<vmem>>, vector<24x1x32xf32>
      %183 = vector.shape_cast %182 : vector<24x1x32xf32> to vector<24x32xf32>
      %184 = vector.shape_cast %181 : vector<24x32xf32> to vector<24x1x32xf32>
      tpu.vector_store %arg8[%c0_202, %c7_203, %c0_204], %184 {strides = array<i32>} : memref<24x8x32xf32, #tpu.memory_space<vmem>>, vector<24x1x32xf32>,
    } else {
    }
    %c0 = arith.constant 0 : index
    %c0_1 = arith.constant 0 : index
    %3 = vector.load %arg6[%c0, %c0_1] : memref<32x8xf32, #tpu.memory_space<vmem>>, vector<32x8xf32>
    %c0_2 = arith.constant 0 : index
    %c0_3 = arith.constant 0 : index
    %c0_4 = arith.constant 0 : index
    %4 = vector.load %arg8[%c0_2, %c0_3, %c0_4] : memref<24x8x32xf32, #tpu.memory_space<vmem>>, vector<1x8x32xf32>
    %5 = vector.shape_cast %4 : vector<1x8x32xf32> to vector<8x32xf32>
    %cst = arith.constant dense<0.000000e+00> : vector<32x32xf32>
    %6 = tpu.matmul %3, %5, %cst {dimension_numbers = #tpu.dot_dimension_numbers<[1], [0], [0], [1], [0, 0, 1, 1], [], []>} : vector<32x8xf32>, vector<8x32xf32>, vector<32x32xf32> -> vector<32x32xf32>
    %c0_5 = arith.constant 0 : index
    %c0_6 = arith.constant 0 : index
    %c0_7 = arith.constant 0 : index
    %c0_8 = arith.constant 0 : index
    %7 = vector.load %arg7[%c0_5, %c0_6, %c0_7, %c0_8] : memref<1x21x32x32xf32, #tpu.memory_space<vmem>>, vector<1x1x32x32xf32>
    %8 = vector.shape_cast %7 : vector<1x1x32x32xf32> to vector<32x32xf32>
    %9 = vector.shape_cast %6 : vector<32x32xf32> to vector<1x1x32x32xf32>
    tpu.vector_store %arg7[%c0_5, %c0_6, %c0_7, %c0_8], %9 {strides = array<i32>} : memref<1x21x32x32xf32, #tpu.memory_space<vmem>>, vector<1x1x32x32xf32>,
    %c1 = arith.constant 1 : index
    %c0_9 = arith.constant 0 : index
    %c0_10 = arith.constant 0 : index
    %10 = vector.load %arg8[%c1, %c0_9, %c0_10] : memref<24x8x32xf32, #tpu.memory_space<vmem>>, vector<1x8x32xf32>
    %11 = vector.shape_cast %10 : vector<1x8x32xf32> to vector<8x32xf32>
    %cst_11 = arith.constant dense<0.000000e+00> : vector<32x32xf32>
    %12 = tpu.matmul %3, %11, %cst_11 {dimension_numbers = #tpu.dot_dimension_numbers<[1], [0], [0], [1], [0, 0, 1, 1], [], []>} : vector<32x8xf32>, vector<8x32xf32>, vector<32x32xf32> -> vector<32x32xf32>
    %c0_12 = arith.constant 0 : index
    %c1_13 = arith.constant 1 : index
    %c0_14 = arith.constant 0 : index
    %c0_15 = arith.constant 0 : index
    %13 = vector.load %arg7[%c0_12, %c1_13, %c0_14, %c0_15] : memref<1x21x32x32xf32, #tpu.memory_space<vmem>>, vector<1x1x32x32xf32>
    %14 = vector.shape_cast %13 : vector<1x1x32x32xf32> to vector<32x32xf32>
    %15 = vector.shape_cast %12 : vector<32x32xf32> to vector<1x1x32x32xf32>
    tpu.vector_store %arg7[%c0_12, %c1_13, %c0_14, %c0_15], %15 {strides = array<i32>} : memref<1x21x32x32xf32, #tpu.memory_space<vmem>>, vector<1x1x32x32xf32>,
    %c2 = arith.constant 2 : index
    %c0_16 = arith.constant 0 : index
    %c0_17 = arith.constant 0 : index
    %16 = vector.load %arg8[%c2, %c0_16, %c0_17] : memref<24x8x32xf32, #tpu.memory_space<vmem>>, vector<1x8x32xf32>
    %17 = vector.shape_cast %16 : vector<1x8x32xf32> to vector<8x32xf32>
    %cst_18 = arith.constant dense<0.000000e+00> : vector<32x32xf32>
    %18 = tpu.matmul %3, %17, %cst_18 {dimension_numbers = #tpu.dot_dimension_numbers<[1], [0], [0], [1], [0, 0, 1, 1], [], []>} : vector<32x8xf32>, vector<8x32xf32>, vector<32x32xf32> -> vector<32x32xf32>
    %c0_19 = arith.constant 0 : index
    %c2_20 = arith.constant 2 : index
    %c0_21 = arith.constant 0 : index
    %c0_22 = arith.constant 0 : index
    %19 = vector.load %arg7[%c0_19, %c2_20, %c0_21, %c0_22] : memref<1x21x32x32xf32, #tpu.memory_space<vmem>>, vector<1x1x32x32xf32>
    %20 = vector.shape_cast %19 : vector<1x1x32x32xf32> to vector<32x32xf32>
    %21 = vector.shape_cast %18 : vector<32x32xf32> to vector<1x1x32x32xf32>
    tpu.vector_store %arg7[%c0_19, %c2_20, %c0_21, %c0_22], %21 {strides = array<i32>} : memref<1x21x32x32xf32, #tpu.memory_space<vmem>>, vector<1x1x32x32xf32>,
    %c3 = arith.constant 3 : index
    %c0_23 = arith.constant 0 : index
    %c0_24 = arith.constant 0 : index
    %22 = vector.load %arg8[%c3, %c0_23, %c0_24] : memref<24x8x32xf32, #tpu.memory_space<vmem>>, vector<1x8x32xf32>
    %23 = vector.shape_cast %22 : vector<1x8x32xf32> to vector<8x32xf32>
    %cst_25 = arith.constant dense<0.000000e+00> : vector<32x32xf32>
    %24 = tpu.matmul %3, %23, %cst_25 {dimension_numbers = #tpu.dot_dimension_numbers<[1], [0], [0], [1], [0, 0, 1, 1], [], []>} : vector<32x8xf32>, vector<8x32xf32>, vector<32x32xf32> -> vector<32x32xf32>
    %c0_26 = arith.constant 0 : index
    %c3_27 = arith.constant 3 : index
    %c0_28 = arith.constant 0 : index
    %c0_29 = arith.constant 0 : index
    %25 = vector.load %arg7[%c0_26, %c3_27, %c0_28, %c0_29] : memref<1x21x32x32xf32, #tpu.memory_space<vmem>>, vector<1x1x32x32xf32>
    %26 = vector.shape_cast %25 : vector<1x1x32x32xf32> to vector<32x32xf32>
    %27 = vector.shape_cast %24 : vector<32x32xf32> to vector<1x1x32x32xf32>
    tpu.vector_store %arg7[%c0_26, %c3_27, %c0_28, %c0_29], %27 {strides = array<i32>} : memref<1x21x32x32xf32, #tpu.memory_space<vmem>>, vector<1x1x32x32xf32>,
    %c4 = arith.constant 4 : index
    %c0_30 = arith.constant 0 : index
    %c0_31 = arith.constant 0 : index
    %28 = vector.load %arg8[%c4, %c0_30, %c0_31] : memref<24x8x32xf32, #tpu.memory_space<vmem>>, vector<1x8x32xf32>
    %29 = vector.shape_cast %28 : vector<1x8x32xf32> to vector<8x32xf32>
    %cst_32 = arith.constant dense<0.000000e+00> : vector<32x32xf32>
    %30 = tpu.matmul %3, %29, %cst_32 {dimension_numbers = #tpu.dot_dimension_numbers<[1], [0], [0], [1], [0, 0, 1, 1], [], []>} : vector<32x8xf32>, vector<8x32xf32>, vector<32x32xf32> -> vector<32x32xf32>
    %c0_33 = arith.constant 0 : index
    %c4_34 = arith.constant 4 : index
    %c0_35 = arith.constant 0 : index
    %c0_36 = arith.constant 0 : index
    %31 = vector.load %arg7[%c0_33, %c4_34, %c0_35, %c0_36] : memref<1x21x32x32xf32, #tpu.memory_space<vmem>>, vector<1x1x32x32xf32>
    %32 = vector.shape_cast %31 : vector<1x1x32x32xf32> to vector<32x32xf32>
    %33 = vector.shape_cast %30 : vector<32x32xf32> to vector<1x1x32x32xf32>
    tpu.vector_store %arg7[%c0_33, %c4_34, %c0_35, %c0_36], %33 {strides = array<i32>} : memref<1x21x32x32xf32, #tpu.memory_space<vmem>>, vector<1x1x32x32xf32>,
    %c5 = arith.constant 5 : index
    %c0_37 = arith.constant 0 : index
    %c0_38 = arith.constant 0 : index
    %34 = vector.load %arg8[%c5, %c0_37, %c0_38] : memref<24x8x32xf32, #tpu.memory_space<vmem>>, vector<1x8x32xf32>
    %35 = vector.shape_cast %34 : vector<1x8x32xf32> to vector<8x32xf32>
    %cst_39 = arith.constant dense<0.000000e+00> : vector<32x32xf32>
    %36 = tpu.matmul %3, %35, %cst_39 {dimension_numbers = #tpu.dot_dimension_numbers<[1], [0], [0], [1], [0, 0, 1, 1], [], []>} : vector<32x8xf32>, vector<8x32xf32>, vector<32x32xf32> -> vector<32x32xf32>
    %c0_40 = arith.constant 0 : index
    %c5_41 = arith.constant 5 : index
    %c0_42 = arith.constant 0 : index
    %c0_43 = arith.constant 0 : index
    %37 = vector.load %arg7[%c0_40, %c5_41, %c0_42, %c0_43] : memref<1x21x32x32xf32, #tpu.memory_space<vmem>>, vector<1x1x32x32xf32>
    %38 = vector.shape_cast %37 : vector<1x1x32x32xf32> to vector<32x32xf32>
    %39 = vector.shape_cast %36 : vector<32x32xf32> to vector<1x1x32x32xf32>
    tpu.vector_store %arg7[%c0_40, %c5_41, %c0_42, %c0_43], %39 {strides = array<i32>} : memref<1x21x32x32xf32, #tpu.memory_space<vmem>>, vector<1x1x32x32xf32>,
    %c6 = arith.constant 6 : index
    %c0_44 = arith.constant 0 : index
    %c0_45 = arith.constant 0 : index
    %40 = vector.load %arg8[%c6, %c0_44, %c0_45] : memref<24x8x32xf32, #tpu.memory_space<vmem>>, vector<1x8x32xf32>
    %41 = vector.shape_cast %40 : vector<1x8x32xf32> to vector<8x32xf32>
    %cst_46 = arith.constant dense<0.000000e+00> : vector<32x32xf32>
    %42 = tpu.matmul %3, %41, %cst_46 {dimension_numbers = #tpu.dot_dimension_numbers<[1], [0], [0], [1], [0, 0, 1, 1], [], []>} : vector<32x8xf32>, vector<8x32xf32>, vector<32x32xf32> -> vector<32x32xf32>
    %c0_47 = arith.constant 0 : index
    %c6_48 = arith.constant 6 : index
    %c0_49 = arith.constant 0 : index
    %c0_50 = arith.constant 0 : index
    %43 = vector.load %arg7[%c0_47, %c6_48, %c0_49, %c0_50] : memref<1x21x32x32xf32, #tpu.memory_space<vmem>>, vector<1x1x32x32xf32>
    %44 = vector.shape_cast %43 : vector<1x1x32x32xf32> to vector<32x32xf32>
    %45 = vector.shape_cast %42 : vector<32x32xf32> to vector<1x1x32x32xf32>
    tpu.vector_store %arg7[%c0_47, %c6_48, %c0_49, %c0_50], %45 {strides = array<i32>} : memref<1x21x32x32xf32, #tpu.memory_space<vmem>>, vector<1x1x32x32xf32>,
    %c7 = arith.constant 7 : index
    %c0_51 = arith.constant 0 : index
    %c0_52 = arith.constant 0 : index
    %46 = vector.load %arg8[%c7, %c0_51, %c0_52] : memref<24x8x32xf32, #tpu.memory_space<vmem>>, vector<1x8x32xf32>
    %47 = vector.shape_cast %46 : vector<1x8x32xf32> to vector<8x32xf32>
    %cst_53 = arith.constant dense<0.000000e+00> : vector<32x32xf32>
    %48 = tpu.matmul %3, %47, %cst_53 {dimension_numbers = #tpu.dot_dimension_numbers<[1], [0], [0], [1], [0, 0, 1, 1], [], []>} : vector<32x8xf32>, vector<8x32xf32>, vector<32x32xf32> -> vector<32x32xf32>
    %c0_54 = arith.constant 0 : index
    %c7_55 = arith.constant 7 : index
    %c0_56 = arith.constant 0 : index
    %c0_57 = arith.constant 0 : index
    %49 = vector.load %arg7[%c0_54, %c7_55, %c0_56, %c0_57] : memref<1x21x32x32xf32, #tpu.memory_space<vmem>>, vector<1x1x32x32xf32>
    %50 = vector.shape_cast %49 : vector<1x1x32x32xf32> to vector<32x32xf32>
    %51 = vector.shape_cast %48 : vector<32x32xf32> to vector<1x1x32x32xf32>
    tpu.vector_store %arg7[%c0_54, %c7_55, %c0_56, %c0_57], %51 {strides = array<i32>} : memref<1x21x32x32xf32, #tpu.memory_space<vmem>>, vector<1x1x32x32xf32>,
    %c8 = arith.constant 8 : index
    %c0_58 = arith.constant 0 : index
    %c0_59 = arith.constant 0 : index
    %52 = vector.load %arg8[%c8, %c0_58, %c0_59] : memref<24x8x32xf32, #tpu.memory_space<vmem>>, vector<1x8x32xf32>
    %53 = vector.shape_cast %52 : vector<1x8x32xf32> to vector<8x32xf32>
    %cst_60 = arith.constant dense<0.000000e+00> : vector<32x32xf32>
    %54 = tpu.matmul %3, %53, %cst_60 {dimension_numbers = #tpu.dot_dimension_numbers<[1], [0], [0], [1], [0, 0, 1, 1], [], []>} : vector<32x8xf32>, vector<8x32xf32>, vector<32x32xf32> -> vector<32x32xf32>
    %c0_61 = arith.constant 0 : index
    %c8_62 = arith.constant 8 : index
    %c0_63 = arith.constant 0 : index
    %c0_64 = arith.constant 0 : index
    %55 = vector.load %arg7[%c0_61, %c8_62, %c0_63, %c0_64] : memref<1x21x32x32xf32, #tpu.memory_space<vmem>>, vector<1x1x32x32xf32>
    %56 = vector.shape_cast %55 : vector<1x1x32x32xf32> to vector<32x32xf32>
    %57 = vector.shape_cast %54 : vector<32x32xf32> to vector<1x1x32x32xf32>
    tpu.vector_store %arg7[%c0_61, %c8_62, %c0_63, %c0_64], %57 {strides = array<i32>} : memref<1x21x32x32xf32, #tpu.memory_space<vmem>>, vector<1x1x32x32xf32>,
    %c9 = arith.constant 9 : index
    %c0_65 = arith.constant 0 : index
    %c0_66 = arith.constant 0 : index
    %58 = vector.load %arg8[%c9, %c0_65, %c0_66] : memref<24x8x32xf32, #tpu.memory_space<vmem>>, vector<1x8x32xf32>
    %59 = vector.shape_cast %58 : vector<1x8x32xf32> to vector<8x32xf32>
    %cst_67 = arith.constant dense<0.000000e+00> : vector<32x32xf32>
    %60 = tpu.matmul %3, %59, %cst_67 {dimension_numbers = #tpu.dot_dimension_numbers<[1], [0], [0], [1], [0, 0, 1, 1], [], []>} : vector<32x8xf32>, vector<8x32xf32>, vector<32x32xf32> -> vector<32x32xf32>
    %c0_68 = arith.constant 0 : index
    %c9_69 = arith.constant 9 : index
    %c0_70 = arith.constant 0 : index
    %c0_71 = arith.constant 0 : index
    %61 = vector.load %arg7[%c0_68, %c9_69, %c0_70, %c0_71] : memref<1x21x32x32xf32, #tpu.memory_space<vmem>>, vector<1x1x32x32xf32>
    %62 = vector.shape_cast %61 : vector<1x1x32x32xf32> to vector<32x32xf32>
    %63 = vector.shape_cast %60 : vector<32x32xf32> to vector<1x1x32x32xf32>
    tpu.vector_store %arg7[%c0_68, %c9_69, %c0_70, %c0_71], %63 {strides = array<i32>} : memref<1x21x32x32xf32, #tpu.memory_space<vmem>>, vector<1x1x32x32xf32>,
    %c10 = arith.constant 10 : index
    %c0_72 = arith.constant 0 : index
    %c0_73 = arith.constant 0 : index
    %64 = vector.load %arg8[%c10, %c0_72, %c0_73] : memref<24x8x32xf32, #tpu.memory_space<vmem>>, vector<1x8x32xf32>
    %65 = vector.shape_cast %64 : vector<1x8x32xf32> to vector<8x32xf32>
    %cst_74 = arith.constant dense<0.000000e+00> : vector<32x32xf32>
    %66 = tpu.matmul %3, %65, %cst_74 {dimension_numbers = #tpu.dot_dimension_numbers<[1], [0], [0], [1], [0, 0, 1, 1], [], []>} : vector<32x8xf32>, vector<8x32xf32>, vector<32x32xf32> -> vector<32x32xf32>
    %c0_75 = arith.constant 0 : index
    %c10_76 = arith.constant 10 : index
    %c0_77 = arith.constant 0 : index
    %c0_78 = arith.constant 0 : index
    %67 = vector.load %arg7[%c0_75, %c10_76, %c0_77, %c0_78] : memref<1x21x32x32xf32, #tpu.memory_space<vmem>>, vector<1x1x32x32xf32>
    %68 = vector.shape_cast %67 : vector<1x1x32x32xf32> to vector<32x32xf32>
    %69 = vector.shape_cast %66 : vector<32x32xf32> to vector<1x1x32x32xf32>
    tpu.vector_store %arg7[%c0_75, %c10_76, %c0_77, %c0_78], %69 {strides = array<i32>} : memref<1x21x32x32xf32, #tpu.memory_space<vmem>>, vector<1x1x32x32xf32>,
    %c11 = arith.constant 11 : index
    %c0_79 = arith.constant 0 : index
    %c0_80 = arith.constant 0 : index
    %70 = vector.load %arg8[%c11, %c0_79, %c0_80] : memref<24x8x32xf32, #tpu.memory_space<vmem>>, vector<1x8x32xf32>
    %71 = vector.shape_cast %70 : vector<1x8x32xf32> to vector<8x32xf32>
    %cst_81 = arith.constant dense<0.000000e+00> : vector<32x32xf32>
    %72 = tpu.matmul %3, %71, %cst_81 {dimension_numbers = #tpu.dot_dimension_numbers<[1], [0], [0], [1], [0, 0, 1, 1], [], []>} : vector<32x8xf32>, vector<8x32xf32>, vector<32x32xf32> -> vector<32x32xf32>
    %c0_82 = arith.constant 0 : index
    %c11_83 = arith.constant 11 : index
    %c0_84 = arith.constant 0 : index
    %c0_85 = arith.constant 0 : index
    %73 = vector.load %arg7[%c0_82, %c11_83, %c0_84, %c0_85] : memref<1x21x32x32xf32, #tpu.memory_space<vmem>>, vector<1x1x32x32xf32>
    %74 = vector.shape_cast %73 : vector<1x1x32x32xf32> to vector<32x32xf32>
    %75 = vector.shape_cast %72 : vector<32x32xf32> to vector<1x1x32x32xf32>
    tpu.vector_store %arg7[%c0_82, %c11_83, %c0_84, %c0_85], %75 {strides = array<i32>} : memref<1x21x32x32xf32, #tpu.memory_space<vmem>>, vector<1x1x32x32xf32>,
    %c12 = arith.constant 12 : index
    %c0_86 = arith.constant 0 : index
    %c0_87 = arith.constant 0 : index
    %76 = vector.load %arg8[%c12, %c0_86, %c0_87] : memref<24x8x32xf32, #tpu.memory_space<vmem>>, vector<1x8x32xf32>
    %77 = vector.shape_cast %76 : vector<1x8x32xf32> to vector<8x32xf32>
    %cst_88 = arith.constant dense<0.000000e+00> : vector<32x32xf32>
    %78 = tpu.matmul %3, %77, %cst_88 {dimension_numbers = #tpu.dot_dimension_numbers<[1], [0], [0], [1], [0, 0, 1, 1], [], []>} : vector<32x8xf32>, vector<8x32xf32>, vector<32x32xf32> -> vector<32x32xf32>
    %c0_89 = arith.constant 0 : index
    %c12_90 = arith.constant 12 : index
    %c0_91 = arith.constant 0 : index
    %c0_92 = arith.constant 0 : index
    %79 = vector.load %arg7[%c0_89, %c12_90, %c0_91, %c0_92] : memref<1x21x32x32xf32, #tpu.memory_space<vmem>>, vector<1x1x32x32xf32>
    %80 = vector.shape_cast %79 : vector<1x1x32x32xf32> to vector<32x32xf32>
    %81 = vector.shape_cast %78 : vector<32x32xf32> to vector<1x1x32x32xf32>
    tpu.vector_store %arg7[%c0_89, %c12_90, %c0_91, %c0_92], %81 {strides = array<i32>} : memref<1x21x32x32xf32, #tpu.memory_space<vmem>>, vector<1x1x32x32xf32>,
    %c13 = arith.constant 13 : index
    %c0_93 = arith.constant 0 : index
    %c0_94 = arith.constant 0 : index
    %82 = vector.load %arg8[%c13, %c0_93, %c0_94] : memref<24x8x32xf32, #tpu.memory_space<vmem>>, vector<1x8x32xf32>
    %83 = vector.shape_cast %82 : vector<1x8x32xf32> to vector<8x32xf32>
    %cst_95 = arith.constant dense<0.000000e+00> : vector<32x32xf32>
    %84 = tpu.matmul %3, %83, %cst_95 {dimension_numbers = #tpu.dot_dimension_numbers<[1], [0], [0], [1], [0, 0, 1, 1], [], []>} : vector<32x8xf32>, vector<8x32xf32>, vector<32x32xf32> -> vector<32x32xf32>
    %c0_96 = arith.constant 0 : index
    %c13_97 = arith.constant 13 : index
    %c0_98 = arith.constant 0 : index
    %c0_99 = arith.constant 0 : index
    %85 = vector.load %arg7[%c0_96, %c13_97, %c0_98, %c0_99] : memref<1x21x32x32xf32, #tpu.memory_space<vmem>>, vector<1x1x32x32xf32>
    %86 = vector.shape_cast %85 : vector<1x1x32x32xf32> to vector<32x32xf32>
    %87 = vector.shape_cast %84 : vector<32x32xf32> to vector<1x1x32x32xf32>
    tpu.vector_store %arg7[%c0_96, %c13_97, %c0_98, %c0_99], %87 {strides = array<i32>} : memref<1x21x32x32xf32, #tpu.memory_space<vmem>>, vector<1x1x32x32xf32>,
    %c14 = arith.constant 14 : index
    %c0_100 = arith.constant 0 : index
    %c0_101 = arith.constant 0 : index
    %88 = vector.load %arg8[%c14, %c0_100, %c0_101] : memref<24x8x32xf32, #tpu.memory_space<vmem>>, vector<1x8x32xf32>
    %89 = vector.shape_cast %88 : vector<1x8x32xf32> to vector<8x32xf32>
    %cst_102 = arith.constant dense<0.000000e+00> : vector<32x32xf32>
    %90 = tpu.matmul %3, %89, %cst_102 {dimension_numbers = #tpu.dot_dimension_numbers<[1], [0], [0], [1], [0, 0, 1, 1], [], []>} : vector<32x8xf32>, vector<8x32xf32>, vector<32x32xf32> -> vector<32x32xf32>
    %c0_103 = arith.constant 0 : index
    %c14_104 = arith.constant 14 : index
    %c0_105 = arith.constant 0 : index
    %c0_106 = arith.constant 0 : index
    %91 = vector.load %arg7[%c0_103, %c14_104, %c0_105, %c0_106] : memref<1x21x32x32xf32, #tpu.memory_space<vmem>>, vector<1x1x32x32xf32>
    %92 = vector.shape_cast %91 : vector<1x1x32x32xf32> to vector<32x32xf32>
    %93 = vector.shape_cast %90 : vector<32x32xf32> to vector<1x1x32x32xf32>
    tpu.vector_store %arg7[%c0_103, %c14_104, %c0_105, %c0_106], %93 {strides = array<i32>} : memref<1x21x32x32xf32, #tpu.memory_space<vmem>>, vector<1x1x32x32xf32>,
    %c15 = arith.constant 15 : index
    %c0_107 = arith.constant 0 : index
    %c0_108 = arith.constant 0 : index
    %94 = vector.load %arg8[%c15, %c0_107, %c0_108] : memref<24x8x32xf32, #tpu.memory_space<vmem>>, vector<1x8x32xf32>
    %95 = vector.shape_cast %94 : vector<1x8x32xf32> to vector<8x32xf32>
    %cst_109 = arith.constant dense<0.000000e+00> : vector<32x32xf32>
    %96 = tpu.matmul %3, %95, %cst_109 {dimension_numbers = #tpu.dot_dimension_numbers<[1], [0], [0], [1], [0, 0, 1, 1], [], []>} : vector<32x8xf32>, vector<8x32xf32>, vector<32x32xf32> -> vector<32x32xf32>
    %c0_110 = arith.constant 0 : index
    %c15_111 = arith.constant 15 : index
    %c0_112 = arith.constant 0 : index
    %c0_113 = arith.constant 0 : index
    %97 = vector.load %arg7[%c0_110, %c15_111, %c0_112, %c0_113] : memref<1x21x32x32xf32, #tpu.memory_space<vmem>>, vector<1x1x32x32xf32>
    %98 = vector.shape_cast %97 : vector<1x1x32x32xf32> to vector<32x32xf32>
    %99 = vector.shape_cast %96 : vector<32x32xf32> to vector<1x1x32x32xf32>
    tpu.vector_store %arg7[%c0_110, %c15_111, %c0_112, %c0_113], %99 {strides = array<i32>} : memref<1x21x32x32xf32, #tpu.memory_space<vmem>>, vector<1x1x32x32xf32>,
    %c16 = arith.constant 16 : index
    %c0_114 = arith.constant 0 : index
    %c0_115 = arith.constant 0 : index
    %100 = vector.load %arg8[%c16, %c0_114, %c0_115] : memref<24x8x32xf32, #tpu.memory_space<vmem>>, vector<1x8x32xf32>
    %101 = vector.shape_cast %100 : vector<1x8x32xf32> to vector<8x32xf32>
    %cst_116 = arith.constant dense<0.000000e+00> : vector<32x32xf32>
    %102 = tpu.matmul %3, %101, %cst_116 {dimension_numbers = #tpu.dot_dimension_numbers<[1], [0], [0], [1], [0, 0, 1, 1], [], []>} : vector<32x8xf32>, vector<8x32xf32>, vector<32x32xf32> -> vector<32x32xf32>
    %c0_117 = arith.constant 0 : index
    %c16_118 = arith.constant 16 : index
    %c0_119 = arith.constant 0 : index
    %c0_120 = arith.constant 0 : index
    %103 = vector.load %arg7[%c0_117, %c16_118, %c0_119, %c0_120] : memref<1x21x32x32xf32, #tpu.memory_space<vmem>>, vector<1x1x32x32xf32>
    %104 = vector.shape_cast %103 : vector<1x1x32x32xf32> to vector<32x32xf32>
    %105 = vector.shape_cast %102 : vector<32x32xf32> to vector<1x1x32x32xf32>
    tpu.vector_store %arg7[%c0_117, %c16_118, %c0_119, %c0_120], %105 {strides = array<i32>} : memref<1x21x32x32xf32, #tpu.memory_space<vmem>>, vector<1x1x32x32xf32>,
    %c17 = arith.constant 17 : index
    %c0_121 = arith.constant 0 : index
    %c0_122 = arith.constant 0 : index
    %106 = vector.load %arg8[%c17, %c0_121, %c0_122] : memref<24x8x32xf32, #tpu.memory_space<vmem>>, vector<1x8x32xf32>
    %107 = vector.shape_cast %106 : vector<1x8x32xf32> to vector<8x32xf32>
    %cst_123 = arith.constant dense<0.000000e+00> : vector<32x32xf32>
    %108 = tpu.matmul %3, %107, %cst_123 {dimension_numbers = #tpu.dot_dimension_numbers<[1], [0], [0], [1], [0, 0, 1, 1], [], []>} : vector<32x8xf32>, vector<8x32xf32>, vector<32x32xf32> -> vector<32x32xf32>
    %c0_124 = arith.constant 0 : index
    %c17_125 = arith.constant 17 : index
    %c0_126 = arith.constant 0 : index
    %c0_127 = arith.constant 0 : index
    %109 = vector.load %arg7[%c0_124, %c17_125, %c0_126, %c0_127] : memref<1x21x32x32xf32, #tpu.memory_space<vmem>>, vector<1x1x32x32xf32>
    %110 = vector.shape_cast %109 : vector<1x1x32x32xf32> to vector<32x32xf32>
    %111 = vector.shape_cast %108 : vector<32x32xf32> to vector<1x1x32x32xf32>
    tpu.vector_store %arg7[%c0_124, %c17_125, %c0_126, %c0_127], %111 {strides = array<i32>} : memref<1x21x32x32xf32, #tpu.memory_space<vmem>>, vector<1x1x32x32xf32>,
    %c18 = arith.constant 18 : index
    %c0_128 = arith.constant 0 : index
    %c0_129 = arith.constant 0 : index
    %112 = vector.load %arg8[%c18, %c0_128, %c0_129] : memref<24x8x32xf32, #tpu.memory_space<vmem>>, vector<1x8x32xf32>
    %113 = vector.shape_cast %112 : vector<1x8x32xf32> to vector<8x32xf32>
    %cst_130 = arith.constant dense<0.000000e+00> : vector<32x32xf32>
    %114 = tpu.matmul %3, %113, %cst_130 {dimension_numbers = #tpu.dot_dimension_numbers<[1], [0], [0], [1], [0, 0, 1, 1], [], []>} : vector<32x8xf32>, vector<8x32xf32>, vector<32x32xf32> -> vector<32x32xf32>
    %c0_131 = arith.constant 0 : index
    %c18_132 = arith.constant 18 : index
    %c0_133 = arith.constant 0 : index
    %c0_134 = arith.constant 0 : index
    %115 = vector.load %arg7[%c0_131, %c18_132, %c0_133, %c0_134] : memref<1x21x32x32xf32, #tpu.memory_space<vmem>>, vector<1x1x32x32xf32>
    %116 = vector.shape_cast %115 : vector<1x1x32x32xf32> to vector<32x32xf32>
    %117 = vector.shape_cast %114 : vector<32x32xf32> to vector<1x1x32x32xf32>
    tpu.vector_store %arg7[%c0_131, %c18_132, %c0_133, %c0_134], %117 {strides = array<i32>} : memref<1x21x32x32xf32, #tpu.memory_space<vmem>>, vector<1x1x32x32xf32>,
    %c19 = arith.constant 19 : index
    %c0_135 = arith.constant 0 : index
    %c0_136 = arith.constant 0 : index
    %118 = vector.load %arg8[%c19, %c0_135, %c0_136] : memref<24x8x32xf32, #tpu.memory_space<vmem>>, vector<1x8x32xf32>
    %119 = vector.shape_cast %118 : vector<1x8x32xf32> to vector<8x32xf32>
    %cst_137 = arith.constant dense<0.000000e+00> : vector<32x32xf32>
    %120 = tpu.matmul %3, %119, %cst_137 {dimension_numbers = #tpu.dot_dimension_numbers<[1], [0], [0], [1], [0, 0, 1, 1], [], []>} : vector<32x8xf32>, vector<8x32xf32>, vector<32x32xf32> -> vector<32x32xf32>
    %c0_138 = arith.constant 0 : index
    %c19_139 = arith.constant 19 : index
    %c0_140 = arith.constant 0 : index
    %c0_141 = arith.constant 0 : index
    %121 = vector.load %arg7[%c0_138, %c19_139, %c0_140, %c0_141] : memref<1x21x32x32xf32, #tpu.memory_space<vmem>>, vector<1x1x32x32xf32>
    %122 = vector.shape_cast %121 : vector<1x1x32x32xf32> to vector<32x32xf32>
    %123 = vector.shape_cast %120 : vector<32x32xf32> to vector<1x1x32x32xf32>
    tpu.vector_store %arg7[%c0_138, %c19_139, %c0_140, %c0_141], %123 {strides = array<i32>} : memref<1x21x32x32xf32, #tpu.memory_space<vmem>>, vector<1x1x32x32xf32>,
    %c20 = arith.constant 20 : index
    %c0_142 = arith.constant 0 : index
    %c0_143 = arith.constant 0 : index
    %124 = vector.load %arg8[%c20, %c0_142, %c0_143] : memref<24x8x32xf32, #tpu.memory_space<vmem>>, vector<1x8x32xf32>
    %125 = vector.shape_cast %124 : vector<1x8x32xf32> to vector<8x32xf32>
    %cst_144 = arith.constant dense<0.000000e+00> : vector<32x32xf32>
    %126 = tpu.matmul %3, %125, %cst_144 {dimension_numbers = #tpu.dot_dimension_numbers<[1], [0], [0], [1], [0, 0, 1, 1], [], []>} : vector<32x8xf32>, vector<8x32xf32>, vector<32x32xf32> -> vector<32x32xf32>
    %c0_145 = arith.constant 0 : index
    %c20_146 = arith.constant 20 : index
    %c0_147 = arith.constant 0 : index
    %c0_148 = arith.constant 0 : index
    %127 = vector.load %arg7[%c0_145, %c20_146, %c0_147, %c0_148] : memref<1x21x32x32xf32, #tpu.memory_space<vmem>>, vector<1x1x32x32xf32>
    %128 = vector.shape_cast %127 : vector<1x1x32x32xf32> to vector<32x32xf32>
    %129 = vector.shape_cast %126 : vector<32x32xf32> to vector<1x1x32x32xf32>
    tpu.vector_store %arg7[%c0_145, %c20_146, %c0_147, %c0_148], %129 {strides = array<i32>} : memref<1x21x32x32xf32, #tpu.memory_space<vmem>>, vector<1x1x32x32xf32>,
    return
  }
  func.func @transform_0(%arg0: i32, %arg1: i32) -> (i32, i32, i32) {
    %c0_i32 = arith.constant 0 : i32
    %c0_i32_0 = arith.constant 0 : i32
    %c0_i32_1 = arith.constant 0 : i32
    return %arg0, %c0_i32, %c0_i32_0 : i32, i32, i32
  }
  func.func @transform_1(%arg0: i32, %arg1: i32) -> (i32, i32) {
    %c0_i32 = arith.constant 0 : i32
    %c0_i32_0 = arith.constant 0 : i32
    %c0_i32_1 = arith.constant 0 : i32
    return %c0_i32, %c0_i32_0 : i32, i32
  }
  func.func @transform_2(%arg0: i32, %arg1: i32) -> (i32, i32) {
    %c0_i32 = arith.constant 0 : i32
    %c0_i32_0 = arith.constant 0 : i32
    %c0_i32_1 = arith.constant 0 : i32
    return %c0_i32, %c0_i32_0 : i32, i32
  }
  func.func @transform_3(%arg0: i32, %arg1: i32) -> (i32, i32) {
    %c0_i32 = arith.constant 0 : i32
    %c0_i32_0 = arith.constant 0 : i32
    %c0_i32_1 = arith.constant 0 : i32
    return %c0_i32, %c0_i32_0 : i32, i32
  }
  func.func @transform_4(%arg0: i32, %arg1: i32) -> (i32, i32) {
    %c0_i32 = arith.constant 0 : i32
    %c0_i32_0 = arith.constant 0 : i32
    return %arg1, %c0_i32 : i32, i32
  }
  func.func @transform_5(%arg0: i32, %arg1: i32) -> (i32, i32, i32, i32) {
    %c0_i32 = arith.constant 0 : i32
    %c0_i32_0 = arith.constant 0 : i32
    %c0_i32_1 = arith.constant 0 : i32
    return %arg0, %c0_i32, %arg1, %c0_i32_0 : i32, i32, i32, i32
  }
}

</mosaic_0001>

<bundles_post_ra>
// kernel: tpu_custom_call.1
= control target key start
LH: loop header
LB: loop body
LE: loop exit
PB: predicated region body
PF: predicated region fallthrough
CT: control target
= control target key end

     0   :  { %10 = vsyncpa [#allocation4], 0  ;;  %s7104_s0 = inlined_call_operand.hbm [shape: f32[2,64,32], index: 0, kind: input, shape index: {}]   ;;  %s7105_s1 = inlined_call_operand.hbm [shape: f32[24,32], index: 1, kind: input, shape index: {}]   ;;  %s7106_s2 = inlined_call_operand.hbm [shape: f32[24,1], index: 2, kind: input, shape index: {}]   ;;  %s7107_s3 = inlined_call_operand.hbm [shape: f32[8,32], index: 3, kind: input, shape index: {}]   ;;  %s7108_s4 = inlined_call_operand.hbm [shape: f32[32,8], index: 4, kind: input, shape index: {}]   ;;  %s7109_s5 = inlined_call_operand.hbm [shape: f32[2,21,32,32], index: 5, kind: output, shape index: {}]  }
   0x1   :  { %12 = vsyncpa [#allocation4 + $0x1], 0 }
   0x2   :  { %13 = vsyncpa [#allocation7], 0 }
   0x3   :  { %14 = vsyncpa [#allocation10], 0 }
   0x4   :  { %15 = vsyncpa [#allocation5], 0 }
   0x5   :  { %17 = vsyncpa [#allocation5 + $0x1], 0  ;;  %s5960_s18 = smov 0   ;;  %s5962_s19 = smov 0  }
   0x6   :  { %s5964_s20 = smov 0   ;;  %s5966_s21 = smov 0  }
   0x7   :  { %s5968_s22 = smov 0   ;;  %s5970_s23 = smov 0  }
   0x8 LB: > { %7116 = sst [smem:[#allocation17_spill]] %s5886_s18  ;;  %s4885_s24 = sadd.s32 4294967295, %s5906_s23   ;;  %s5906_s23 = sphi %s5970_s23, %s23_s23   ;;  %s5902_s22 = sphi %s5968_s22, %s7141_s22   ;;  %s5898_s21 = sphi %s5966_s21, %s7140_s21   ;;  %s5894_s20 = sphi %s5964_s20, %s7139_s20   ;;  %s5890_s19 = sphi %s5962_s19, %s7138_s19   ;;  %s5886_s18 = sphi %s5960_s18, %s7137_s18  }
   0x9   : > { %s4886_s25 = sadd.s32 4294967294, %s5906_s23   ;;  %p55_p0 = scmp.ne.s32.totalorder %s5890_s19, %s5886_s18 }
   0xa   : > { %p5994_p1 = scmp.eq.s32.totalorder %s4885_s24, 0  ;;  %p5998_p2 = scmp.eq.s32.totalorder %s4885_s24, 1 }
   0xb   : > { %p176_p3 = scmp.eq.s32.totalorder %s4886_s25, 1  ;;  %p4887_p5 = scmp.ge.s32.totalorder %s5906_s23, 1 }
   0xc   : > { %s7117_s26 = scalar_select %p5994_p1, 1, 0 }
   0xd   : > { %s7118_s27 = scalar_select %p5998_p2, 1, 0 }
   0xe   : > { %p6004_p4 = por %p5994_p1, %p55_p0  ;;  %p6009_p6 = por %p176_p3, %p55_p0 }
   0xf   : > { %p183_p7 = scmp.lt.s32.totalorder %s5906_s23, 3  ;;  %s5908_s6 = smov [#allocation6]  }
  0x10   : > { %s7119_s28 = scalar_select %p6004_p4, 1, 0 }
  0x11   : > { %s7120_s29 = scalar_select %p6009_p6, 1, 0 }
  0x12   : > { %p6014_p8 = pnand %p4887_p5, %p183_p7  ;;  %s195_s7 = sshll.u32 %s5908_s6, 4  ;;  %s6018_s7 = int_to_ptr.vmem [resolvable:$true] %s195_s7 }
  0x13   : > { %7121 = sst [smem:[#allocation18_spill]] %s7120_s29  ;;  %s5909_s9 = smov [#allocation9]  }
  0x14   : > { %s7122_s30 = scalar_select %p6014_p8, 1, 0 }
  0x15   : > { %p5572_p9 = pneg %p6014_p8  ;;  %s222_s10 = sshll.u32 %s5909_s9, 4  ;;  %s6029_s10 = int_to_ptr.vmem [resolvable:$true] %s222_s10 }
  0x16   : > { %s5910_s11 = smov [#allocation8]   ;;  %s5674_s15 = scalar_lea.hbm %s7105_s1, 384 }
  0x17   : > { %p6025_p11 = pnand %p5572_p9, %p5994_p1  ;;  %s6031_s12 = sshll.u32 %s5910_s11, 4  ;;  %s209_s12 = int_to_ptr.vmem [resolvable:$true] %s6031_s12 }
  0x18   : > { %p5675_p12 = scmp.ne.s32.totalorder %s7105_s1, %s5674_s15  ;;  %p5681_p5 = scmp.lt.u32.totalorder %s5674_s15, %s7105_s1 }
  0x19   : > { %p6041_p13 = pneg %p6025_p11 }
  0x1b   : > { %p5677_p0 = pnand %p6041_p13, %p5675_p12 }
  0x1d   : > { %p5678_p3 = pneg %p5677_p0 }
  0x1f   : > { %p5683_p7 = pnand %p5681_p5, %p5678_p3 }
  0x21   : > { %5686 = shalt.err (!%p5683_p7)
}
  0x22   : > { %s5687_s9 = scalar_lea.vmem %s6018_s7, 384  ;;  %p5695_p1 = scmp.lt.s32.totalorder %s6018_s7, %s6018_s7 }
  0x23   : > { %p5688_p9 = scmp.ne.s32.totalorder %s6018_s7, %s5687_s9  ;;  %p5696_p4 = scmp.lt.s32.totalorder %s5687_s9, %s5687_s9 }
  0x25   : > { %p5690_p10 = pnand %p5688_p9, %p6041_p13  ;;  %p5697_p12 = por %p5696_p4, %p5695_p1 }
  0x27   : > { %p5691_p6 = pneg %p5690_p10 }
  0x29   : > { %p5698_p0 = pnand %p5697_p12, %p5691_p6 }
  0x2b   : > { %5701 = shalt.err (!%p5698_p0)
}
  0x2c   : > { %s5911_s11 = smov 128   ;;  %s5912_s13 = smov 8  }
  0x2d   : > { %5575 = dma.hbm_to_vmem [thread:$0]  (!%p6025_p11), %s7105_s1, 384, %s6018_s7, [#allocation7], %s5911_s11, %s5911_s11, %s5912_s13  }
  0x2e   : > { %s5702_s25 = scalar_lea.hbm %s7107_s3, 128 }
  0x2f   : > { %p5703_p1 = scmp.ne.s32.totalorder %s7107_s3, %s5702_s25  ;;  %p5709_p10 = scmp.lt.u32.totalorder %s5702_s25, %s7107_s3 }
  0x31   : > { %p5705_p4 = pnand %p5703_p1, %p6041_p13 }
  0x33   : > { %p5706_p6 = pneg %p5705_p4 }
  0x35   : > { %p5711_p3 = pnand %p5709_p10, %p5706_p6 }
  0x37   : > { %5714 = shalt.err (!%p5711_p3)
}
  0x38   : > { %s5715_s7 = scalar_lea.vmem %s6029_s10, 128  ;;  %p5723_p12 = scmp.lt.s32.totalorder %s6029_s10, %s6029_s10 }
  0x39   : > { %p5716_p5 = scmp.ne.s32.totalorder %s6029_s10, %s5715_s7  ;;  %p5724_p0 = scmp.lt.s32.totalorder %s5715_s7, %s5715_s7 }
  0x3b   : > { %p5718_p7 = pnand %p5716_p5, %p6041_p13  ;;  %p5725_p1 = por %p5724_p0, %p5723_p12 }
  0x3d   : > { %p5719_p9 = pneg %p5718_p7 }
  0x3f   : > { %p5726_p4 = pnand %p5725_p1, %p5719_p9 }
  0x41   : > { %5729 = shalt.err (!%p5726_p4)
}
  0x42   : > { %5581 = dma.hbm_to_vmem [thread:$0]  (!%p6025_p11), %s7107_s3, 128, %s6029_s10, [#allocation10]  }
  0x43   : > { %s5730_s16 = scalar_lea.hbm %s7106_s2, 384 }
  0x44   : > { %p5731_p6 = scmp.ne.s32.totalorder %s7106_s2, %s5730_s16  ;;  %p5737_p5 = scmp.lt.u32.totalorder %s5730_s16, %s7106_s2 }
  0x46   : > { %p5733_p10 = pnand %p5731_p6, %p6041_p13 }
  0x48   : > { %p5734_p3 = pneg %p5733_p10 }
  0x4a   : > { %p5739_p7 = pnand %p5737_p5, %p5734_p3 }
  0x4c   : > { %5742 = shalt.err (!%p5739_p7)
}
  0x4d   : > { %s5743_s7 = scalar_lea.vmem %s209_s12, 384  ;;  %p5751_p1 = scmp.lt.s32.totalorder %s209_s12, %s209_s12 }
  0x4e   : > { %p5744_p9 = scmp.ne.s32.totalorder %s209_s12, %s5743_s7  ;;  %p5752_p4 = scmp.lt.s32.totalorder %s5743_s7, %s5743_s7 }
  0x50   : > { %p5746_p12 = pnand %p5744_p9, %p6041_p13  ;;  %p5753_p8 = por %p5752_p4, %p5751_p1 }
  0x52   : > { %p5747_p0 = pneg %p5746_p12 }
  0x54   : > { %p5754_p2 = pnand %p5753_p8, %p5747_p0 }
  0x56   : > { %5757 = shalt.err (!%p5754_p2)
}
  0x57   : > { %5578 = dma.hbm_to_vmem [thread:$0]  (!%p6025_p11), %s7106_s2, 384, %s209_s12, [#allocation7], %s5911_s11, %s5911_s11, %s5912_s13  }
  0x58   : > { %s5913_s29 = smov [#allocation11]   ;;  %s5758_s17 = scalar_lea.hbm %s7108_s4, 512 }
  0x59   : > { %s235_s14 = sshll.u32 %s5913_s29, 4  ;;  %p5759_p2 = scmp.ne.s32.totalorder %s7108_s4, %s5758_s17  ;;  %s236_s14 = int_to_ptr.vmem [resolvable:$true] %s235_s14 }
  0x5a   : > { %p5765_p10 = scmp.lt.u32.totalorder %s5758_s17, %s7108_s4 }
  0x5b   : > { %p5761_p8 = pnand %p5759_p2, %p6041_p13 }
  0x5d   : > { %p5762_p6 = pneg %p5761_p8 }
  0x5f   : > { %p5767_p3 = pnand %p5765_p10, %p5762_p6 }
  0x61   : > { %5770 = shalt.err (!%p5767_p3)
}
  0x62   : > { %s5771_s12 = scalar_lea.vmem %s236_s14, 512  ;;  %p5779_p12 = scmp.lt.s32.totalorder %s236_s14, %s236_s14 }
  0x63   : > { %p5772_p5 = scmp.ne.s32.totalorder %s236_s14, %s5771_s12  ;;  %p5780_p0 = scmp.lt.s32.totalorder %s5771_s12, %s5771_s12 }
  0x65   : > { %p5774_p7 = pnand %p5772_p5, %p6041_p13  ;;  %p5781_p1 = por %p5780_p0, %p5779_p12 }
  0x67   : > { %p5775_p9 = pneg %p5774_p7 }
  0x69   : > { %p5782_p4 = pnand %p5781_p1, %p5775_p9 }
  0x6b   : > { %5785 = shalt.err (!%p5782_p4)
}
  0x6c   : > { %5584 = dma.hbm_to_vmem [thread:$0]  (!%p6025_p11), %s7108_s4, 512, %s236_s14, [#allocation10], %s5911_s11, %s5911_s11, %s5912_s13  }
  0x6d   : > { %s35_s24 = sadd.s32 1, %s5902_s22  ;;  %s42_s8 = sadd.s32 1, %s5894_s20 }
  0x6e   : > { %p37_p13 = scmp.ge.s32.totalorder %s35_s24, 2  ;;  %p49_p2 = scmp.ne.s32.totalorder %s5894_s20, %s5890_s19 }
  0x6f   : > { %p50_p8 = scmp.eq.s32.totalorder %s5906_s23, 0  ;;  %p5597_p6 = scmp.lt.s32.totalorder %s5906_s23, 2 }
  0x70   : > { %s7143_s24 = smov (%p37_p13, %s35_s24), 0  ;;  %p7125_p3 = scmp.ne.s32.totalorder %s7118_s27, 0 }
  0x71   : > { %p51_p10 = por %p50_p8, %p49_p2  ;;  %s39_s15 = ssub.s32 %s5902_s22, %s7143_s24 }
  0x72   : > { %p6141_p5 = por %p7125_p3, %p49_p2  ;;  %s249_s16 = sand.u32 1, %s5894_s20  }
  0x73   : > { %p40_p7 = scmp.eq.s32.totalorder %s39_s15, 0  ;;  %s4893_s14 = sshll.u32 %s249_s16, 6 }
  0x74   : > { %s5104_s17 = sshll.u32 %s5902_s22, 10  ;;  %s253_s27 = scalar_lea.vmem [#allocation3], %s4893_s14 }
  0x75   : > { %s6150_s25 = scalar_select %p40_p7, %s5894_s20, %s42_s8  }
  0x76   : > { %s6155_s7 = scalar_lea.hbm %s7104_s0, %s5104_s17  ;;  %s260_s12 = sshll.u32 %s253_s27, 4  ;;  %s6163_s12 = int_to_ptr.vmem [resolvable:$true] %s260_s12 }
  0x77   : > { %p6159_p11 = pnand %p5597_p6, %p51_p10  ;;  %s6165_s18 = scalar_lea.sflag [#allocation4], %s249_s16 }
  0x78   : > { %s5786_s8 = scalar_lea.hbm %s6155_s7, 1024  ;;  %s5791_s17 = scalar_lea.hbm %s7104_s0, 2048 }
  0x79   : > { %p5787_p9 = scmp.ne.s32.totalorder %s6155_s7, %s5786_s8  ;;  %p5788_p12 = pneg %p6159_p11 }
  0x7a   : > { %p5792_p4 = scmp.lt.u32.totalorder %s6155_s7, %s7104_s0  ;;  %p5793_p13 = scmp.lt.u32.totalorder %s5791_s17, %s5786_s8 }
  0x7b   : > { %p5789_p0 = pnand %p5788_p12, %p5787_p9  ;;  %p5795_p8 = scmp.lt.u32.totalorder %s5786_s8, %s6155_s7 }
  0x7c   : > { %p5794_p2 = por %p5793_p13, %p5792_p4 }
  0x7d   : > { %p5790_p1 = pneg %p5789_p0 }
  0x7e   : > { %p5796_p6 = por %p5795_p8, %p5794_p2 }
  0x80   : > { %p5797_p10 = pnand %p5796_p6, %p5790_p1 }
  0x82   : > { %5800 = shalt.err (!%p5797_p10)
}
  0x83   : > { %s5801_s16 = scalar_lea.vmem %s6163_s12, 1024  ;;  %s5914_s27 = smov [#allocation3]  }
  0x84   : > { %p5802_p3 = scmp.ne.s32.totalorder %s6163_s12, %s5801_s16  ;;  %s5806_s15 = sshll.u32 %s5914_s27, 4  ;;  %s5807_s15 = int_to_ptr.vmem [resolvable:$false] %s5806_s15 }
  0x85   : > { %s5808_s14 = scalar_lea.vmem %s5807_s15, 2048  ;;  %p5809_p0 = scmp.lt.s32.totalorder %s6163_s12, %s5807_s15 }
  0x86   : > { %p5804_p7 = pnand %p5802_p3, %p5788_p12  ;;  %p5810_p4 = scmp.lt.s32.totalorder %s5808_s14, %s5801_s16 }
  0x88   : > { %p5805_p9 = pneg %p5804_p7  ;;  %p5811_p13 = por %p5810_p4, %p5809_p0 }
  0x8a   : > { %p5812_p2 = pnand %p5811_p13, %p5805_p9 }
  0x8c   : > { %5815 = shalt.err (!%p5812_p2)
}
  0x8d   : > { %5588 = dma.hbm_to_vmem [thread:$0]  (!%p6159_p11), %s6155_s7, 1024, %s6163_s12, %s6165_s18, %s5911_s11, %s5911_s11, %s5912_s13  }
  0x8e   : > { %p7128_p12 = scmp.ne.s32.totalorder %s7122_s30, 0 }
  0x8f   : > { %s6199_s8 = sand.u32 (!%p7128_p12), 1, %s5890_s19   ;;  %p7129_p1 = scmp.ne.s32.totalorder (!%p7128_p12), %s7119_s28, 0 }
  0x90   : > { %272 = sbr.rel (%p7128_p12) target bundleno = 1129 (0x469), region = 40  ;;  %s4897_s17 = sshll.u32 (!%p7128_p12), %s6199_s8, 6 }
  0x91   : > { %s275_s6 = scalar_lea.sflag (!%p7128_p12), [#allocation4], %s6199_s8  ;;  %s6203_s9 = scalar_lea.vmem (!%p7128_p12), [#allocation3], %s4897_s17 }
  0x97   : > { %5869 = dma.done.wait (%p7129_p1), %s275_s6, 1024  }
  0x98   : > { %5871 = vsyncadd (%p7129_p1), %s275_s6, 4294966272  ;;  %p7130_p11 = scmp.ne.s32.totalorder %s7117_s26, 0 }
  0x9a   : > { %5873 = dma.done.wait (%p7130_p11), [#allocation7], 768  }
  0x9b   : > { %5875 = vsyncadd (%p7130_p11), [#allocation7], 4294966528 }
  0x9c   : > { %5877 = dma.done.wait (%p7130_p11), [#allocation10], 640  }
  0x9d   : > { %5879 = vsyncadd (%p7130_p11), [#allocation10], 4294966656  ;;  %v5915_v0 = vmov 0.0|0.0   ;;  %vm5916_vm0 = vmmov 0   ;;  %v5917_v1 = vmov 0.0   ;;  %v5918_v2 = vmov 0  }
  0x9e   : > { %5534 = vmatprep.subr.bf16.mxu0 %v5915_v0  ;;  %5269 = vmatprep.mubr.msk.f32.mxu0 %vm5916_vm0, %v5917_v1  ;;  %vm356_vm1 = vcmask 261120   ;;  %v330_v3 = vld [vmem:[%s6203_s9] sm:$0xff]  ;;  %v331_v4 = vld [vmem:[%s6203_s9 + $0x8] sm:$0xff]  ;;  %v338_v7 = vld [vmem:[#allocation8] sm:$0xff]  ;;  %vm471_vm3 = vcmask 64512   ;;  %s5919_s26 = smov 120   ;;  %v568_v58 = vlaneseq }
  0x9f   : > { %5671 = vset.pattern.permute.xlu0 %v5918_v2  ;;  %5672 = vset.pattern.permute.xlu1 %v5918_v2  ;;  %vm6226_vm2 = vmpackc.low %vm356_vm1, %vm356_vm1  ;;  %v5535_v6 = vpack.c.bf16 %v331_v4, %v330_v3  ;;  %v332_v8 = vld [vmem:[%s6203_s9 + $0x10] sm:$0xff]  ;;  %v333_v9 = vld [vmem:[%s6203_s9 + $0x18] sm:$0xff]  ;;  %s5920_s28 = smov 112   ;;  %s5921_s30 = smov 104   ;;  %v5926_v56 = vmov 1966171168  }
  0xa0   : > { %5278 = vmatprep.subr.mxu1 %v5917_v1  ;;  %5280 = vmatprep.mubr.msk.f32.mxu1 %vm5916_vm0, %v5917_v1  ;;  %v340_v10 = vld [vmem:[#allocation8 + $0x10] sm:$0xff]  ;;  %v339_v11 = vld [vmem:[#allocation8 + $0x8] sm:$0xff]  ;;  %v5539_v12 = vpack.c.bf16 %v333_v9, %v332_v8  ;;  %v336_v16 = vld [vmem:[%s6203_s9 + $0x30] sm:$0xff]  ;;  %s5922_s11 = smov 96   ;;  %s5923_s13 = smov 88   ;;  %v566_v57 = vunpack.c.l.s4 %v5926_v56  ;;  %v569_v60 = vshrl.u32 %v568_v58, 7 }
  0xa1   : > { %5537 = vmatpush3.bf16.xpose.msk.msra.mxu0 %vm6226_vm2, %v5535_v6  ;;  %343 = vperm.xlu0 %5671, %v338_v7   ;;  %v334_v13 = vld [vmem:[%s6203_s9 + $0x20] sm:$0xff]  ;;  %v335_v14 = vld [vmem:[%s6203_s9 + $0x28] sm:$0xff]  ;;  %v337_v17 = vld [vmem:[%s6203_s9 + $0x38] sm:$0xff]  ;;  %s5924_s7 = smov 80   ;;  %s5925_s12 = smov 72   ;;  %vm735_vm4 = vcmask 253952  }
  0xa2   : > { %5538 = vmatprep.subr.bf16.mxu0 %v5915_v0  ;;  %353 = vperm.xlu1 %5672, %v340_v10   ;;  %v5543_v15 = vpack.c.bf16 %v335_v14, %v334_v13  ;;  %v5547_v18 = vpack.c.bf16 %v337_v17, %v336_v16  ;;  %v327_v19 = vld [vmem:[#allocation6] sm:$0xff]  ;;  %v328_v20 = vld [vmem:[#allocation6 + $0x8] sm:$0xff]  ;;  %v329_v21 = vld [vmem:[#allocation6 + $0x10] sm:$0xff]  ;;  %v567_v59 = vunpack.c.0.s8 %v566_v57  ;;  %s5550_s10 = smul.u32 672, %s6199_s8  ;;  %s5927_s9 = smov [#allocation12]  }
  0xa3   : > { %v6254_v22 = vld [vmem:[#allocation9] sm:$0xff]  ;;  %s5551_s16 = smul.u32 10752, %s5898_s21  ;;  %s4746_s21 = scalar_lea.sflag [#allocation5], %s6199_s8 }
  0xa4   : > { %5279 = vmatpush3.msra.mxu1 %v6254_v22  ;;  %v6338_v61 = vsub.s32 %v567_v59, %v569_v60  ;;  %s6878_s18 = scalar_lea.vmem [#allocation12], %s5550_s10 }
  0xa5   : > { %348 = vperm.xlu0 %5671, %v339_v11   ;;  %5289 = vmatprep.subr.mxu1 %v5917_v1  ;;  %s4761_s27 = sshll.u32 %s6878_s18, 4  ;;  %s7049_s17 = scalar_lea.hbm %s7109_s5, %s5551_s16  ;;  %s7051_s27 = int_to_ptr.vmem [resolvable:$true] %s4761_s27 }
  0xa6   : > { %s5816_s6 = scalar_lea.vmem %s7051_s27, 10752 }
  0xa7   : > { %p5817_p8 = scmp.ne.s32.totalorder %s7051_s27, %s5816_s6 }
  0xa9   : > { %5541 = vmatpush3.bf16.xpose.msk.msra.mxu0 %vm6226_vm2, %v5539_v12  ;;  %p5818_p6 = pnand %p5817_p8, %p6141_p5 }
  0xaa   : > { %5542 = vmatprep.subr.bf16.mxu0 %v5915_v0 }
  0xab   : > { %p5819_p10 = pneg %p5818_p6 }
  0xb1   : > { %5545 = vmatpush3.bf16.xpose.msk.msra.mxu0 %vm6226_vm2, %v5543_v15 }
  0xb2   : > { %5546 = vmatprep.subr.bf16.mxu0 %v5915_v0 }
  0xb9   : > { %5549 = vmatpush3.bf16.xpose.msk.msra.mxu0 %vm6226_vm2, %v5547_v18 }
  0xba   : > { %5322 = vmatprep.subr.mxu0 %v5917_v1 }
  0xc0   : > { %5270 = vmatmul.mubr.msk.f32.vlgmr.msra.gmra.mrb[0].mxu0 %vm356_vm1, %v327_v19 }
  0xc1   : > { %5272 = vmatprep.mubr.msk.f32.mxu0 %vm5916_vm0, %v5917_v1  ;;  %5323 = vmatpush3.msra.mxu0 %v6254_v22 }
  0xc2   : > { %5344 = vmatprep.subr.mxu0 %v5917_v1 }
  0xc4   : > { %5273 = vmatmul.mubr.msk.f32.gmra.mrb[2].mxu0 %vm356_vm1, %v328_v20 }
  0xc5   : > { %5275 = vmatprep.mubr.msk.f32.mxu0 %vm5916_vm0, %v5917_v1 }
  0xc8   : > { %5276 = vmatmul.mubr.msk.f32.gmra.mrb[4].mxu0 %vm356_vm1, %v329_v21 }
  0xc9   : > { %5324 = vmatprep.mubr.msk.f32.mxu0 %vm5916_vm0, %v5917_v1 }
 0x120   : > { %v344_v23 = vpop.permute.xlu0 %343 }
 0x121   : > { %v354_v31 = vpop.permute.xlu1 %353 }
 0x124   : > { %v349_v27 = vpop.permute.xlu0 %348 }
 0x193   : > { %v456_v24 = vpop.f32.mrb[0].mxu0 }
 0x194   : > { %v457_v25 = vadd.f32 %v456_v24, %v344_v23  ;;  %v5271_v26 = vpop.f32.mrb[1].mxu0 }
 0x196   : > { %761 = vrot.lane.b32.xlu1 %v457_v25, %s5919_s26  ;;  %5281 = vmatmul.mubr.msk.f32.vlgmr.msra.gmra.mrb[0].mxu1 %vm471_vm3, %v457_v25 }
 0x197   : > { %v461_v28 = vpop.f32.mrb[2].mxu0  ;;  %5283 = vmatprep.mubr.msk.f32.mxu1 %vm5916_vm0, %v5917_v1  ;;  %5290 = vmatpush3.msra.mxu1 %v6254_v22 }
 0x198   : > { %v462_v29 = vadd.f32 %v461_v28, %v349_v27  ;;  %v5274_v30 = vpop.f32.mrb[3].mxu0  ;;  %5300 = vmatprep.subr.mxu1 %v5917_v1 }
 0x19a   : > { %763 = vrot.lane.b32.xlu0 %v462_v29, %s5919_s26  ;;  %5284 = vmatmul.mubr.msk.f32.gmra.mrb[2].mxu1 %vm471_vm3, %v462_v29 }
 0x19b   : > { %v466_v32 = vpop.f32.mrb[4].mxu0  ;;  %5286 = vmatprep.mubr.msk.f32.mxu1 %vm5916_vm0, %v5917_v1 }
 0x19c   : > { %v467_v33 = vadd.f32 %v466_v32, %v354_v31  ;;  %v5277_v34 = vpop.f32.mrb[5].mxu0 }
 0x19e   : > { %1052 = vrot.lane.b32.xlu0 %v457_v25, %s5920_s28  ;;  %765 = vrot.lane.b32.xlu1 %v467_v33, %s5919_s26  ;;  %s5820_s26 = sshll.u32 %s5927_s9, 4  ;;  %s5821_s26 = int_to_ptr.vmem [resolvable:$false] %s5820_s26 }
 0x19f   : > { %5287 = vmatmul.mubr.msk.f32.gmra.mrb[4].mxu1 %vm471_vm3, %v467_v33  ;;  %p5823_p3 = scmp.lt.s32.totalorder %s7051_s27, %s5821_s26 }
 0x1a0   : > { %5291 = vmatprep.mubr.msk.f32.mxu1 %vm5916_vm0, %v5917_v1 }
 0x1a2   : > { %1056 = vrot.lane.b32.xlu0 %v467_v33, %s5920_s28  ;;  %1054 = vrot.lane.b32.xlu1 %v462_v29, %s5920_s28  ;;  %s5822_s28 = scalar_lea.vmem %s5821_s26, 21504 }
 0x1a3   : > { %p5824_p7 = scmp.lt.s32.totalorder %s5822_s28, %s5816_s6 }
 0x1a5   : > { %p5825_p9 = por %p5824_p7, %p5823_p3 }
 0x1a6   : > { %1345 = vrot.lane.b32.xlu0 %v462_v29, %s5921_s30  ;;  %1343 = vrot.lane.b32.xlu1 %v457_v25, %s5921_s30 }
 0x1a7   : > { %p5826_p0 = pnand %p5825_p9, %p5819_p10 }
 0x1aa   : > { %1634 = vrot.lane.b32.xlu0 %v457_v25, %s5922_s11  ;;  %1347 = vrot.lane.b32.xlu1 %v467_v33, %s5921_s30 }
 0x1ae   : > { %1636 = vrot.lane.b32.xlu0 %v462_v29, %s5922_s11  ;;  %1925 = vrot.lane.b32.xlu1 %v457_v25, %s5923_s13 }
 0x1b2   : > { %1638 = vrot.lane.b32.xlu0 %v467_v33, %s5922_s11  ;;  %1927 = vrot.lane.b32.xlu1 %v462_v29, %s5923_s13 }
 0x1b6   : > { %2216 = vrot.lane.b32.xlu0 %v457_v25, %s5924_s7  ;;  %1929 = vrot.lane.b32.xlu1 %v467_v33, %s5923_s13 }
 0x1ba   : > { %2218 = vrot.lane.b32.xlu0 %v462_v29, %s5924_s7  ;;  %2507 = vrot.lane.b32.xlu1 %v457_v25, %s5925_s12 }
 0x1be   : > { %2220 = vrot.lane.b32.xlu0 %v467_v33, %s5924_s7  ;;  %2509 = vrot.lane.b32.xlu1 %v462_v29, %s5925_s12 }
 0x1c2   : > { %2511 = vrot.lane.b32.xlu1 %v467_v33, %s5925_s12 }
 0x208   : > { %v762_v35 = vpop.permute.xlu1 %761 }
 0x209   : > { %5292 = vmatmul.mubr.msk.f32.vlgmr.msra.gmra.mrb[6].mxu1 %vm471_vm3, %v762_v35 }
 0x20a   : > { %5294 = vmatprep.mubr.msk.f32.mxu1 %vm5916_vm0, %v5917_v1  ;;  %5301 = vmatpush3.msra.mxu1 %v6254_v22 }
 0x20b   : > { %5311 = vmatprep.subr.mxu1 %v5917_v1 }
 0x20c   : > { %v764_v36 = vpop.permute.xlu0 %763 }
 0x20d   : > { %5295 = vmatmul.mubr.msk.f32.gmra.mrb[8].mxu1 %vm471_vm3, %v764_v36 }
 0x20e   : > { %5297 = vmatprep.mubr.msk.f32.mxu1 %vm5916_vm0, %v5917_v1 }
 0x210   : > { %v1053_v37 = vpop.permute.xlu0 %1052  ;;  %v766_v38 = vpop.permute.xlu1 %765 }
 0x211   : > { %5298 = vmatmul.mubr.msk.f32.gmra.mrb[10].mxu1 %vm471_vm3, %v766_v38 }
 0x212   : > { %5302 = vmatprep.mubr.msk.f32.mxu1 %vm5916_vm0, %v5917_v1 }
 0x214   : > { %v1057_v39 = vpop.permute.xlu0 %1056  ;;  %v1055_v40 = vpop.permute.xlu1 %1054 }
 0x215   : > { %5303 = vmatmul.mubr.msk.f32.vlgmr.msra.gmra.mrb[12].mxu1 %vm471_vm3, %v1053_v37 }
 0x216   : > { %5305 = vmatprep.mubr.msk.f32.mxu1 %vm5916_vm0, %v5917_v1  ;;  %5312 = vmatpush3.msra.mxu1 %v6254_v22 }
 0x217   : > { %5333 = vmatprep.subr.mxu1 %v5917_v1 }
 0x218   : > { %v1346_v41 = vpop.permute.xlu0 %1345  ;;  %v1344_v42 = vpop.permute.xlu1 %1343 }
 0x219   : > { %5306 = vmatmul.mubr.msk.f32.gmra.mrb[14].mxu1 %vm471_vm3, %v1055_v40 }
 0x21a   : > { %5308 = vmatprep.mubr.msk.f32.mxu1 %vm5916_vm0, %v5917_v1 }
 0x21c   : > { %v1635_v43 = vpop.permute.xlu0 %1634  ;;  %v1348_v44 = vpop.permute.xlu1 %1347 }
 0x21d   : > { %5309 = vmatmul.mubr.msk.f32.gmra.mrb[16].mxu1 %vm471_vm3, %v1057_v39  ;;  %5325 = vmatmul.mubr.msk.f32.vlgmr.msra.gmra.mrb[6].mxu0 %vm471_vm3, %v1635_v43  ;;  %v6378_v39 = vld [vmem:[#allocation11] sm:$0xff] }
 0x21e   : > { %5327 = vmatprep.mubr.msk.f32.mxu0 %vm5916_vm0, %v5917_v1  ;;  %5313 = vmatprep.mubr.msk.f32.mxu1 %vm5916_vm0, %v5917_v1 }
 0x21f   : > { %5345 = vmatpush3.msra.mxu0 %v6254_v22 }
 0x220   : > { %v1637_v45 = vpop.permute.xlu0 %1636  ;;  %v1926_v46 = vpop.permute.xlu1 %1925 }
 0x221   : > { %5314 = vmatmul.mubr.msk.f32.vlgmr.msra.gmra.mrb[18].mxu1 %vm471_vm3, %v1344_v42  ;;  %5328 = vmatmul.mubr.msk.f32.gmra.mrb[8].mxu0 %vm471_vm3, %v1637_v45 }
 0x222   : > { %5330 = vmatprep.mubr.msk.f32.mxu0 %vm5916_vm0, %v5917_v1  ;;  %5316 = vmatprep.mubr.msk.f32.mxu1 %vm5916_vm0, %v5917_v1 }
 0x223   : > { %5334 = vmatpush3.msra.mxu1 %v6254_v22 }
 0x224   : > { %v1639_v47 = vpop.permute.xlu0 %1638  ;;  %5355 = vmatprep.subr.mxu1 %v5917_v1  ;;  %v1928_v48 = vpop.permute.xlu1 %1927 }
 0x225   : > { %5317 = vmatmul.mubr.msk.f32.gmra.mrb[20].mxu1 %vm471_vm3, %v1346_v41  ;;  %5331 = vmatmul.mubr.msk.f32.gmra.mrb[10].mxu0 %vm471_vm3, %v1639_v47 }
 0x226   : > { %5346 = vmatprep.mubr.msk.f32.mxu0 %vm5916_vm0, %v5917_v1  ;;  %5319 = vmatprep.mubr.msk.f32.mxu1 %vm5916_vm0, %v5917_v1 }
 0x228   : > { %v2217_v49 = vpop.permute.xlu0 %2216  ;;  %v1930_v51 = vpop.permute.xlu1 %1929 }
 0x229   : > { %5320 = vmatmul.mubr.msk.f32.gmra.mrb[22].mxu1 %vm471_vm3, %v1348_v44  ;;  %5347 = vmatmul.mubr.msk.f32.vlgmr.msra.gmra.mrb[12].mxu0 %vm471_vm3, %v2217_v49 }
 0x22a   : > { %5349 = vmatprep.mubr.msk.f32.mxu0 %vm5916_vm0, %v5917_v1  ;;  %5335 = vmatprep.mubr.msk.f32.mxu1 %vm5916_vm0, %v5917_v1 }
 0x22c   : > { %v2219_v50 = vpop.permute.xlu0 %2218  ;;  %v2508_v53 = vpop.permute.xlu1 %2507 }
 0x22d   : > { %5336 = vmatmul.mubr.msk.f32.vlgmr.msra.gmra.mrb[24].mxu1 %vm471_vm3, %v1926_v46  ;;  %5350 = vmatmul.mubr.msk.f32.gmra.mrb[14].mxu0 %vm471_vm3, %v2219_v50 }
 0x22e   : > { %5352 = vmatprep.mubr.msk.f32.mxu0 %vm5916_vm0, %v5917_v1  ;;  %5338 = vmatprep.mubr.msk.f32.mxu1 %vm5916_vm0, %v5917_v1 }
 0x22f   : > { %5356 = vmatpush3.msra.mxu1 %v6254_v22 }
 0x230   : > { %v2221_v52 = vpop.permute.xlu0 %2220  ;;  %v2510_v54 = vpop.permute.xlu1 %2509 }
 0x231   : > { %5339 = vmatmul.mubr.msk.f32.gmra.mrb[26].mxu1 %vm471_vm3, %v1928_v48  ;;  %5353 = vmatmul.mubr.msk.f32.gmra.mrb[16].mxu0 %vm471_vm3, %v2221_v52 }
 0x232   : > { %5341 = vmatprep.mubr.msk.f32.mxu1 %vm5916_vm0, %v5917_v1  ;;  %5368 = vmatprep.mubr.msk.f32.mxu0 %vm471_vm3, %v6378_v39 }
 0x234   : > { %v2512_v55 = vpop.permute.xlu1 %2511 }
 0x235   : > { %5342 = vmatmul.mubr.msk.f32.gmra.mrb[28].mxu1 %vm471_vm3, %v1930_v51 }
 0x236   : > { %5357 = vmatprep.mubr.msk.f32.mxu1 %vm5916_vm0, %v5917_v1 }
 0x239   : > { %5358 = vmatmul.mubr.msk.f32.vlgmr.msra.gmra.mrb[30].mxu1 %vm471_vm3, %v2508_v53 }
 0x23a   : > { %5360 = vmatprep.mubr.msk.f32.mxu1 %vm5916_vm0, %v5917_v1 }
 0x23d   : > { %5361 = vmatmul.mubr.msk.f32.gmra.mrb[32].mxu1 %vm471_vm3, %v2510_v54 }
 0x23e   : > { %5363 = vmatprep.mubr.msk.f32.mxu1 %vm5916_vm0, %v5917_v1 }
 0x241   : > { %5364 = vmatmul.mubr.msk.f32.gmra.mrb[34].mxu1 %vm471_vm3, %v2512_v55 }
 0x242   : > { %5376 = vmatprep.mubr.msk.f32.mxu1 %vm471_vm3, %v6378_v39 }
 0x269   : > { %v547_v62 = vpop.f32.mrb[0].mxu1 }
 0x26a   : > { %v564_v63 = vcombine.high %v547_v62, %v547_v62  ;;  %v571_v0 = vrot.slane %v547_v62, %v6338_v61  ;;  %v5282_v2 = vpop.f32.mrb[1].mxu1 }
 0x26c   : > { %v578_v3 = vrot.slane %v564_v63, %v6338_v61  ;;  %v579_v4 = vcombine.high %v571_v0, %v571_v0  ;;  %v587_v1 = vrot.slane %v571_v0, %v6338_v61 }
 0x26d   : > { %v552_v5 = vpop.f32.mrb[2].mxu1 }
 0x26e   : > { %v580_v6 = vcombine.high %v578_v3, %v578_v3  ;;  %v594_v7 = vrot.slane %v578_v3, %v6338_v61  ;;  %v601_v8 = vrot.slane %v579_v4, %v6338_v61  ;;  %v609_v9 = vcombine.high %v587_v1, %v587_v1  ;;  %736 = vst.msk [vmem:[#allocation2] sm:$0x1] %vm735_vm4, %v587_v1  ;;  %v5285_v10 = vpop.f32.mrb[3].mxu1 }
 0x26f   : > { %v613_v11 = vcombine.high %v552_v5, %v552_v5  ;;  %v620_v12 = vrot.slane %v552_v5, %v6338_v61 }
 0x270   : > { %v608_v13 = vrot.slane %v580_v6, %v6338_v61  ;;  %v610_v14 = vcombine.high %v594_v7, %v594_v7  ;;  %v611_v15 = vcombine.high %v601_v8, %v601_v8  ;;  %737 = vst.msk [vmem:[#allocation2 + $0x8] sm:$0x1] %vm735_vm4, %v601_v8  ;;  %738 = vst.msk [vmem:[#allocation2 + $0x10] sm:$0x1] %vm735_vm4, %v609_v9 }
 0x271   : > { %740 = vst.msk [vmem:[#allocation2 + $0x20] sm:$0x1] %vm735_vm4, %v594_v7  ;;  %v627_v16 = vrot.slane %v613_v11, %v6338_v61  ;;  %v628_v17 = vcombine.high %v620_v12, %v620_v12  ;;  %v636_v18 = vrot.slane %v620_v12, %v6338_v61 }
 0x272   : > { %v612_v19 = vcombine.high %v608_v13, %v608_v13  ;;  %739 = vst.msk [vmem:[#allocation2 + $0x18] sm:$0x1] %vm735_vm4, %v611_v15  ;;  %741 = vst.msk [vmem:[#allocation2 + $0x28] sm:$0x1] %vm735_vm4, %v608_v13  ;;  %v557_v20 = vpop.f32.mrb[4].mxu1 }
 0x273   : > { %742 = vst.msk [vmem:[#allocation2 + $0x30] sm:$0x1] %vm735_vm4, %v610_v14  ;;  %v629_v21 = vcombine.high %v627_v16, %v627_v16  ;;  %v643_v22 = vrot.slane %v627_v16, %v6338_v61  ;;  %v650_v23 = vrot.slane %v628_v17, %v6338_v61  ;;  %v658_v24 = vcombine.high %v636_v18, %v636_v18  ;;  %v5288_v25 = vpop.f32.mrb[5].mxu1 }
 0x274   : > { %744 = vst.msk [vmem:[#allocation2 + $0x40] sm:$0x1] %vm735_vm4, %v636_v18  ;;  %743 = vst.msk [vmem:[#allocation2 + $0x38] sm:$0x1] %vm735_vm4, %v612_v19  ;;  %v662_v26 = vcombine.high %v557_v20, %v557_v20  ;;  %v669_v27 = vrot.slane %v557_v20, %v6338_v61 }
 0x275   : > { %v657_v28 = vrot.slane %v629_v21, %v6338_v61  ;;  %v659_v29 = vcombine.high %v643_v22, %v643_v22  ;;  %v660_v30 = vcombine.high %v650_v23, %v650_v23  ;;  %745 = vst.msk [vmem:[#allocation2 + $0x48] sm:$0x1] %vm735_vm4, %v650_v23  ;;  %746 = vst.msk [vmem:[#allocation2 + $0x50] sm:$0x1] %vm735_vm4, %v658_v24 }
 0x276   : > { %748 = vst.msk [vmem:[#allocation2 + $0x60] sm:$0x1] %vm735_vm4, %v643_v22  ;;  %v676_v31 = vrot.slane %v662_v26, %v6338_v61  ;;  %v677_v32 = vcombine.high %v669_v27, %v669_v27  ;;  %v685_v33 = vrot.slane %v669_v27, %v6338_v61 }
 0x277   : > { %v661_v34 = vcombine.high %v657_v28, %v657_v28  ;;  %747 = vst.msk [vmem:[#allocation2 + $0x58] sm:$0x1] %vm735_vm4, %v660_v30  ;;  %749 = vst.msk [vmem:[#allocation2 + $0x68] sm:$0x1] %vm735_vm4, %v657_v28 }
 0x278   : > { %750 = vst.msk [vmem:[#allocation2 + $0x70] sm:$0x1] %vm735_vm4, %v659_v29  ;;  %v692_v35 = vrot.slane %v676_v31, %v6338_v61  ;;  %v699_v36 = vrot.slane %v677_v32, %v6338_v61  ;;  %v707_v37 = vcombine.high %v685_v33, %v685_v33  ;;  %752 = vst.msk [vmem:[#allocation2 + $0x80] sm:$0x1] %vm735_vm4, %v685_v33 }
 0x279   : > { %751 = vst.msk [vmem:[#allocation2 + $0x78] sm:$0x1] %vm735_vm4, %v661_v34 }
 0x27a   : > { %v709_v38 = vcombine.high %v699_v36, %v699_v36  ;;  %753 = vst.msk [vmem:[#allocation2 + $0x88] sm:$0x1] %vm735_vm4, %v699_v36  ;;  %754 = vst.msk [vmem:[#allocation2 + $0x90] sm:$0x1] %vm735_vm4, %v707_v37 }
 0x27b   : > { %756 = vst.msk [vmem:[#allocation2 + $0xa0] sm:$0x1] %vm735_vm4, %v692_v35 }
 0x27c   : > { %755 = vst.msk [vmem:[#allocation2 + $0x98] sm:$0x1] %vm735_vm4, %v709_v38 }
 0x2dc   : > { %v839_v40 = vpop.f32.mrb[6].mxu1 }
 0x2dd   : > { %v856_v41 = vcombine.high %v839_v40, %v839_v40  ;;  %v863_v42 = vrot.slane %v839_v40, %v6338_v61  ;;  %v5293_v43 = vpop.f32.mrb[7].mxu1 }
 0x2df   : > { %v870_v44 = vrot.slane %v856_v41, %v6338_v61  ;;  %v871_v45 = vcombine.high %v863_v42, %v863_v42  ;;  %v879_v46 = vrot.slane %v863_v42, %v6338_v61 }
 0x2e0   : > { %v844_v47 = vpop.f32.mrb[8].mxu1 }
 0x2e1   : > { %v872_v48 = vcombine.high %v870_v44, %v870_v44  ;;  %v886_v49 = vrot.slane %v870_v44, %v6338_v61  ;;  %v893_v50 = vrot.slane %v871_v45, %v6338_v61  ;;  %v901_v51 = vcombine.high %v879_v46, %v879_v46  ;;  %1027 = vst.msk [vmem:[#allocation2 + $0x1] sm:$0x1] %vm735_vm4, %v879_v46  ;;  %v5296_v52 = vpop.f32.mrb[9].mxu1 }
 0x2e2   : > { %v905_v53 = vcombine.high %v844_v47, %v844_v47  ;;  %v912_v54 = vrot.slane %v844_v47, %v6338_v61 }
 0x2e3   : > { %v900_v55 = vrot.slane %v872_v48, %v6338_v61  ;;  %v902_v56 = vcombine.high %v886_v49, %v886_v49  ;;  %v903_v57 = vcombine.high %v893_v50, %v893_v50  ;;  %1028 = vst.msk [vmem:[#allocation2 + $0x9] sm:$0x1] %vm735_vm4, %v893_v50  ;;  %1029 = vst.msk [vmem:[#allocation2 + $0x11] sm:$0x1] %vm735_vm4, %v901_v51 }
 0x2e4   : > { %1031 = vst.msk [vmem:[#allocation2 + $0x21] sm:$0x1] %vm735_vm4, %v886_v49  ;;  %v919_v58 = vrot.slane %v905_v53, %v6338_v61  ;;  %v920_v59 = vcombine.high %v912_v54, %v912_v54  ;;  %v928_v60 = vrot.slane %v912_v54, %v6338_v61  ;;  %v849_v62 = vpop.f32.mrb[10].mxu1 }
 0x2e5   : > { %v904_v63 = vcombine.high %v900_v55, %v900_v55  ;;  %1030 = vst.msk [vmem:[#allocation2 + $0x19] sm:$0x1] %vm735_vm4, %v903_v57  ;;  %1032 = vst.msk [vmem:[#allocation2 + $0x29] sm:$0x1] %vm735_vm4, %v900_v55  ;;  %v954_v0 = vcombine.high %v849_v62, %v849_v62  ;;  %v961_v2 = vrot.slane %v849_v62, %v6338_v61  ;;  %v5299_v3 = vpop.f32.mrb[11].mxu1 }
 0x2e6   : > { %1033 = vst.msk [vmem:[#allocation2 + $0x31] sm:$0x1] %vm735_vm4, %v902_v56  ;;  %v921_v4 = vcombine.high %v919_v58, %v919_v58  ;;  %v935_v1 = vrot.slane %v919_v58, %v6338_v61  ;;  %v942_v5 = vrot.slane %v920_v59, %v6338_v61  ;;  %v950_v6 = vcombine.high %v928_v60, %v928_v60 }
 0x2e7   : > { %1035 = vst.msk [vmem:[#allocation2 + $0x41] sm:$0x1] %vm735_vm4, %v928_v60  ;;  %1034 = vst.msk [vmem:[#allocation2 + $0x39] sm:$0x1] %vm735_vm4, %v904_v63  ;;  %v968_v7 = vrot.slane %v954_v0, %v6338_v61  ;;  %v969_v8 = vcombine.high %v961_v2, %v961_v2  ;;  %v977_v9 = vrot.slane %v961_v2, %v6338_v61 }
 0x2e8   : > { %v949_v10 = vrot.slane %v921_v4, %v6338_v61  ;;  %v951_v11 = vcombine.high %v935_v1, %v935_v1  ;;  %v952_v12 = vcombine.high %v942_v5, %v942_v5  ;;  %1036 = vst.msk [vmem:[#allocation2 + $0x49] sm:$0x1] %vm735_vm4, %v942_v5  ;;  %1037 = vst.msk [vmem:[#allocation2 + $0x51] sm:$0x1] %vm735_vm4, %v950_v6  ;;  %v1130_v13 = vpop.f32.mrb[12].mxu1 }
 0x2e9   : > { %1039 = vst.msk [vmem:[#allocation2 + $0x61] sm:$0x1] %vm735_vm4, %v935_v1  ;;  %v984_v14 = vrot.slane %v968_v7, %v6338_v61  ;;  %v991_v15 = vrot.slane %v969_v8, %v6338_v61  ;;  %v999_v16 = vcombine.high %v977_v9, %v977_v9  ;;  %1043 = vst.msk [vmem:[#allocation2 + $0x81] sm:$0x1] %vm735_vm4, %v977_v9  ;;  %v5304_v17 = vpop.f32.mrb[13].mxu1 }
 0x2ea   : > { %v953_v18 = vcombine.high %v949_v10, %v949_v10  ;;  %1038 = vst.msk [vmem:[#allocation2 + $0x59] sm:$0x1] %vm735_vm4, %v952_v12  ;;  %1040 = vst.msk [vmem:[#allocation2 + $0x69] sm:$0x1] %vm735_vm4, %v949_v10  ;;  %v1147_v19 = vcombine.high %v1130_v13, %v1130_v13  ;;  %v1154_v20 = vrot.slane %v1130_v13, %v6338_v61 }
 0x2eb   : > { %1041 = vst.msk [vmem:[#allocation2 + $0x71] sm:$0x1] %vm735_vm4, %v951_v11  ;;  %v1001_v21 = vcombine.high %v991_v15, %v991_v15  ;;  %1044 = vst.msk [vmem:[#allocation2 + $0x89] sm:$0x1] %vm735_vm4, %v991_v15 }
 0x2ec   : > { %1045 = vst.msk [vmem:[#allocation2 + $0x91] sm:$0x1] %vm735_vm4, %v999_v16  ;;  %1047 = vst.msk [vmem:[#allocation2 + $0xa1] sm:$0x1] %vm735_vm4, %v984_v14  ;;  %v1161_v22 = vrot.slane %v1147_v19, %v6338_v61  ;;  %v1162_v23 = vcombine.high %v1154_v20, %v1154_v20  ;;  %v1170_v24 = vrot.slane %v1154_v20, %v6338_v61  ;;  %v1135_v25 = vpop.f32.mrb[14].mxu1 }
 0x2ed   : > { %1042 = vst.msk [vmem:[#allocation2 + $0x79] sm:$0x1] %vm735_vm4, %v953_v18  ;;  %1046 = vst.msk [vmem:[#allocation2 + $0x99] sm:$0x1] %vm735_vm4, %v1001_v21  ;;  %v1196_v26 = vcombine.high %v1135_v25, %v1135_v25  ;;  %v1203_v27 = vrot.slane %v1135_v25, %v6338_v61  ;;  %v5307_v28 = vpop.f32.mrb[15].mxu1 }
 0x2ee   : > { %v1163_v29 = vcombine.high %v1161_v22, %v1161_v22  ;;  %v1177_v30 = vrot.slane %v1161_v22, %v6338_v61  ;;  %v1184_v31 = vrot.slane %v1162_v23, %v6338_v61  ;;  %v1192_v32 = vcombine.high %v1170_v24, %v1170_v24  ;;  %1318 = vst.msk [vmem:[#allocation2 + $0x2] sm:$0x1] %vm735_vm4, %v1170_v24 }
 0x2ef   : > { %v1210_v33 = vrot.slane %v1196_v26, %v6338_v61  ;;  %v1211_v34 = vcombine.high %v1203_v27, %v1203_v27  ;;  %v1219_v35 = vrot.slane %v1203_v27, %v6338_v61 }
 0x2f0   : > { %v1191_v36 = vrot.slane %v1163_v29, %v6338_v61  ;;  %v1193_v37 = vcombine.high %v1177_v30, %v1177_v30  ;;  %v1194_v38 = vcombine.high %v1184_v31, %v1184_v31  ;;  %1319 = vst.msk [vmem:[#allocation2 + $0xa] sm:$0x1] %vm735_vm4, %v1184_v31  ;;  %1320 = vst.msk [vmem:[#allocation2 + $0x12] sm:$0x1] %vm735_vm4, %v1192_v32  ;;  %v1140_v40 = vpop.f32.mrb[16].mxu1  ;;  %v1712_v41 = vpop.f32.mrb[6].mxu0 }
 0x2f1   : > { %1322 = vst.msk [vmem:[#allocation2 + $0x22] sm:$0x1] %vm735_vm4, %v1177_v30  ;;  %v1212_v42 = vcombine.high %v1210_v33, %v1210_v33  ;;  %v1226_v43 = vrot.slane %v1210_v33, %v6338_v61  ;;  %v1233_v44 = vrot.slane %v1211_v34, %v6338_v61  ;;  %v1241_v45 = vcombine.high %v1219_v35, %v1219_v35  ;;  %v5310_v46 = vpop.f32.mrb[17].mxu1  ;;  %v5326_v47 = vpop.f32.mrb[7].mxu0 }
 0x2f2   : > { %1326 = vst.msk [vmem:[#allocation2 + $0x42] sm:$0x1] %vm735_vm4, %v1219_v35  ;;  %v1195_v48 = vcombine.high %v1191_v36, %v1191_v36  ;;  %1321 = vst.msk [vmem:[#allocation2 + $0x1a] sm:$0x1] %vm735_vm4, %v1194_v38  ;;  %v1245_v49 = vcombine.high %v1140_v40, %v1140_v40  ;;  %v1252_v50 = vrot.slane %v1140_v40, %v6338_v61 }
 0x2f3   : > { %1323 = vst.msk [vmem:[#allocation2 + $0x2a] sm:$0x1] %vm735_vm4, %v1191_v36  ;;  %1324 = vst.msk [vmem:[#allocation2 + $0x32] sm:$0x1] %vm735_vm4, %v1193_v37  ;;  %v1729_v51 = vcombine.high %v1712_v41, %v1712_v41  ;;  %v1240_v52 = vrot.slane %v1212_v42, %v6338_v61  ;;  %v1242_v53 = vcombine.high %v1226_v43, %v1226_v43 }
 0x2f4   : > { %v1243_v54 = vcombine.high %v1233_v44, %v1233_v44  ;;  %1327 = vst.msk [vmem:[#allocation2 + $0x4a] sm:$0x1] %vm735_vm4, %v1233_v44  ;;  %1328 = vst.msk [vmem:[#allocation2 + $0x52] sm:$0x1] %vm735_vm4, %v1241_v45  ;;  %v1736_v55 = vrot.slane %v1712_v41, %v6338_v61  ;;  %v1259_v56 = vrot.slane %v1245_v49, %v6338_v61  ;;  %v1421_v60 = vpop.f32.mrb[18].mxu1  ;;  %v1717_v62 = vpop.f32.mrb[8].mxu0 }
 0x2f5   : > { %1330 = vst.msk [vmem:[#allocation2 + $0x62] sm:$0x1] %vm735_vm4, %v1226_v43  ;;  %1325 = vst.msk [vmem:[#allocation2 + $0x3a] sm:$0x1] %vm735_vm4, %v1195_v48  ;;  %v1260_v57 = vcombine.high %v1252_v50, %v1252_v50  ;;  %v1268_v58 = vrot.slane %v1252_v50, %v6338_v61  ;;  %v1743_v59 = vrot.slane %v1729_v51, %v6338_v61  ;;  %v5315_v4 = vpop.f32.mrb[19].mxu1  ;;  %v5329_v1 = vpop.f32.mrb[9].mxu0 }
 0x2f6   : > { %v1244_v63 = vcombine.high %v1240_v52, %v1240_v52  ;;  %1329 = vst.msk [vmem:[#allocation2 + $0x5a] sm:$0x1] %vm735_vm4, %v1243_v54  ;;  %1331 = vst.msk [vmem:[#allocation2 + $0x6a] sm:$0x1] %vm735_vm4, %v1240_v52  ;;  %v1744_v0 = vcombine.high %v1736_v55, %v1736_v55  ;;  %v1752_v2 = vrot.slane %v1736_v55, %v6338_v61 }
 0x2f7   : > { %1332 = vst.msk [vmem:[#allocation2 + $0x72] sm:$0x1] %vm735_vm4, %v1242_v53  ;;  %v1438_v3 = vcombine.high %v1421_v60, %v1421_v60  ;;  %v1275_v5 = vrot.slane %v1259_v56, %v6338_v61  ;;  %v1282_v6 = vrot.slane %v1260_v57, %v6338_v61  ;;  %v1290_v7 = vcombine.high %v1268_v58, %v1268_v58 }
 0x2f8   : > { %1334 = vst.msk [vmem:[#allocation2 + $0x82] sm:$0x1] %vm735_vm4, %v1268_v58  ;;  %1333 = vst.msk [vmem:[#allocation2 + $0x7a] sm:$0x1] %vm735_vm4, %v1244_v63  ;;  %v1745_v8 = vcombine.high %v1743_v59, %v1743_v59  ;;  %v1759_v9 = vrot.slane %v1743_v59, %v6338_v61  ;;  %v1766_v10 = vrot.slane %v1744_v0, %v6338_v61  ;;  %v1426_v14 = vpop.f32.mrb[20].mxu1  ;;  %v6466_v15 = vpop.f32.mrb[10].mxu0 }
 0x2f9   : > { %v1774_v11 = vcombine.high %v1752_v2, %v1752_v2  ;;  %1900 = vst.msk [vmem:[#allocation2 + $0x4] sm:$0x1] %vm735_vm4, %v1752_v2  ;;  %v1292_v12 = vcombine.high %v1282_v6, %v1282_v6  ;;  %1335 = vst.msk [vmem:[#allocation2 + $0x8a] sm:$0x1] %vm735_vm4, %v1282_v6  ;;  %v1445_v13 = vrot.slane %v1421_v60, %v6338_v61  ;;  %v5318_v20 = vpop.f32.mrb[21].mxu1  ;;  %v5332_v21 = vpop.f32.mrb[11].mxu0 }
 0x2fa   : > { %1336 = vst.msk [vmem:[#allocation2 + $0x92] sm:$0x1] %vm735_vm4, %v1290_v7  ;;  %1338 = vst.msk [vmem:[#allocation2 + $0xa2] sm:$0x1] %vm735_vm4, %v1275_v5  ;;  %v1773_v16 = vrot.slane %v1745_v8, %v6338_v61  ;;  %v1775_v17 = vcombine.high %v1759_v9, %v1759_v9  ;;  %v1776_v18 = vcombine.high %v1766_v10, %v1766_v10 }
 0x2fb   : > { %1901 = vst.msk [vmem:[#allocation2 + $0xc] sm:$0x1] %vm735_vm4, %v1766_v10  ;;  %1902 = vst.msk [vmem:[#allocation2 + $0x14] sm:$0x1] %vm735_vm4, %v1774_v11  ;;  %v1452_v19 = vrot.slane %v1438_v3, %v6338_v61  ;;  %v1453_v22 = vcombine.high %v1445_v13, %v1445_v13  ;;  %v1461_v23 = vrot.slane %v1445_v13, %v6338_v61 }
 0x2fc   : > { %1904 = vst.msk [vmem:[#allocation2 + $0x24] sm:$0x1] %vm735_vm4, %v1759_v9  ;;  %1337 = vst.msk [vmem:[#allocation2 + $0x9a] sm:$0x1] %vm735_vm4, %v1292_v12  ;;  %v1778_v24 = vcombine.high %v1717_v62, %v1717_v62  ;;  %v1777_v25 = vcombine.high %v1773_v16, %v1773_v16  ;;  %v1785_v28 = vrot.slane %v1717_v62, %v6338_v61  ;;  %v6483_v33 = vpop.f32.mrb[22].mxu1  ;;  %v6485_v34 = vpop.f32.mrb[12].mxu0 }
 0x2fd   : > { %1903 = vst.msk [vmem:[#allocation2 + $0x1c] sm:$0x1] %vm735_vm4, %v1776_v18  ;;  %1905 = vst.msk [vmem:[#allocation2 + $0x2c] sm:$0x1] %vm735_vm4, %v1773_v16  ;;  %v1454_v26 = vcombine.high %v1452_v19, %v1452_v19  ;;  %v1468_v27 = vrot.slane %v1452_v19, %v6338_v61  ;;  %v1475_v29 = vrot.slane %v1453_v22, %v6338_v61  ;;  %v5321_v40 = vpop.f32.mrb[23].mxu1  ;;  %v5348_v41 = vpop.f32.mrb[13].mxu0 }
 0x2fe   : > { %1906 = vst.msk [vmem:[#allocation2 + $0x34] sm:$0x1] %vm735_vm4, %v1775_v17  ;;  %v1483_v30 = vcombine.high %v1461_v23, %v1461_v23  ;;  %1609 = vst.msk [vmem:[#allocation2 + $0x3] sm:$0x1] %vm735_vm4, %v1461_v23  ;;  %v1792_v31 = vrot.slane %v1778_v24, %v6338_v61  ;;  %v1487_v32 = vcombine.high %v1426_v14, %v1426_v14 }
 0x2ff   : > { %1907 = vst.msk [vmem:[#allocation2 + $0x3c] sm:$0x1] %vm735_vm4, %v1777_v25  ;;  %v1482_v35 = vrot.slane %v1454_v26, %v6338_v61  ;;  %v1484_v36 = vcombine.high %v1468_v27, %v1468_v27  ;;  %1613 = vst.msk [vmem:[#allocation2 + $0x23] sm:$0x1] %vm735_vm4, %v1468_v27  ;;  %v1793_v37 = vcombine.high %v1785_v28, %v1785_v28 }
 0x300   : > { %v1801_v38 = vrot.slane %v1785_v28, %v6338_v61  ;;  %v1485_v42 = vcombine.high %v1475_v29, %v1475_v29  ;;  %1610 = vst.msk [vmem:[#allocation2 + $0xb] sm:$0x1] %vm735_vm4, %v1475_v29  ;;  %1611 = vst.msk [vmem:[#allocation2 + $0x13] sm:$0x1] %vm735_vm4, %v1483_v30  ;;  %v1794_v43 = vcombine.high %v1792_v31, %v1792_v31  ;;  %v6504_v54 = vpop.f32.mrb[24].mxu1  ;;  %v6506_v55 = vpop.f32.mrb[14].mxu0 }
 0x301   : > { %v1808_v44 = vrot.slane %v1792_v31, %v6338_v61  ;;  %v1494_v45 = vrot.slane %v1426_v14, %v6338_v61  ;;  %v1486_v46 = vcombine.high %v1482_v35, %v1482_v35  ;;  %1614 = vst.msk [vmem:[#allocation2 + $0x2b] sm:$0x1] %vm735_vm4, %v1482_v35  ;;  %1615 = vst.msk [vmem:[#allocation2 + $0x33] sm:$0x1] %vm735_vm4, %v1484_v36  ;;  %v5337_v60 = vpop.f32.mrb[25].mxu1  ;;  %v5351_v62 = vpop.f32.mrb[15].mxu0 }
 0x302   : > { %v1815_v47 = vrot.slane %v1793_v37, %v6338_v61  ;;  %v1823_v48 = vcombine.high %v1801_v38, %v1801_v38  ;;  %1908 = vst.msk [vmem:[#allocation2 + $0x44] sm:$0x1] %vm735_vm4, %v1801_v38  ;;  %v1501_v49 = vrot.slane %v1487_v32, %v6338_v61  ;;  %1612 = vst.msk [vmem:[#allocation2 + $0x1b] sm:$0x1] %vm735_vm4, %v1485_v42 }
 0x303   : > { %v1822_v50 = vrot.slane %v1794_v43, %v6338_v61  ;;  %v1824_v51 = vcombine.high %v1808_v44, %v1808_v44  ;;  %1912 = vst.msk [vmem:[#allocation2 + $0x64] sm:$0x1] %vm735_vm4, %v1808_v44  ;;  %v1502_v52 = vcombine.high %v1494_v45, %v1494_v45  ;;  %v1510_v53 = vrot.slane %v1494_v45, %v6338_v61 }
 0x304   : > { %1616 = vst.msk [vmem:[#allocation2 + $0x3b] sm:$0x1] %vm735_vm4, %v1486_v46  ;;  %v1825_v56 = vcombine.high %v1815_v47, %v1815_v47  ;;  %1909 = vst.msk [vmem:[#allocation2 + $0x4c] sm:$0x1] %vm735_vm4, %v1815_v47  ;;  %v1503_v57 = vcombine.high %v1501_v49, %v1501_v49  ;;  %v1517_v58 = vrot.slane %v1501_v49, %v6338_v61  ;;  %v6532_v11 = vpop.f32.mrb[26].mxu1  ;;  %v6534_v12 = vpop.f32.mrb[16].mxu0 }
 0x305   : > { %1910 = vst.msk [vmem:[#allocation2 + $0x54] sm:$0x1] %vm735_vm4, %v1823_v48  ;;  %v1827_v59 = vcombine.high %v6466_v15, %v6466_v15  ;;  %v1826_v63 = vcombine.high %v1822_v50, %v1822_v50  ;;  %1913 = vst.msk [vmem:[#allocation2 + $0x6c] sm:$0x1] %vm735_vm4, %v1822_v50  ;;  %v1524_v0 = vrot.slane %v1502_v52, %v6338_v61  ;;  %v5340_v16 = vpop.f32.mrb[27].mxu1  ;;  %v5354_v17 = vpop.f32.mrb[17].mxu0 }
 0x306   : > { %1914 = vst.msk [vmem:[#allocation2 + $0x74] sm:$0x1] %vm735_vm4, %v1824_v51  ;;  %v1532_v2 = vcombine.high %v1510_v53, %v1510_v53  ;;  %1617 = vst.msk [vmem:[#allocation2 + $0x43] sm:$0x1] %vm735_vm4, %v1510_v53  ;;  %v1834_v3 = vrot.slane %v6466_v15, %v6338_v61  ;;  %v1531_v4 = vrot.slane %v1503_v57, %v6338_v61 }
 0x307   : > { %1911 = vst.msk [vmem:[#allocation2 + $0x5c] sm:$0x1] %vm735_vm4, %v1825_v56  ;;  %v1533_v1 = vcombine.high %v1517_v58, %v1517_v58  ;;  %1621 = vst.msk [vmem:[#allocation2 + $0x63] sm:$0x1] %vm735_vm4, %v1517_v58  ;;  %v1841_v5 = vrot.slane %v1827_v59, %v6338_v61  ;;  %v1536_v6 = vcombine.high %v6483_v33, %v6483_v33 }
 0x308   : > { %1915 = vst.msk [vmem:[#allocation2 + $0x7c] sm:$0x1] %vm735_vm4, %v1826_v63  ;;  %v1534_v7 = vcombine.high %v1524_v0, %v1524_v0  ;;  %1618 = vst.msk [vmem:[#allocation2 + $0x4b] sm:$0x1] %vm735_vm4, %v1524_v0  ;;  %v1842_v8 = vcombine.high %v1834_v3, %v1834_v3  ;;  %v1850_v9 = vrot.slane %v1834_v3, %v6338_v61  ;;  %v6553_v27 = vpop.f32.mrb[28].mxu1 }
 0x309   : > { %1619 = vst.msk [vmem:[#allocation2 + $0x53] sm:$0x1] %vm735_vm4, %v1532_v2  ;;  %v1543_v10 = vrot.slane %v6483_v33, %v6338_v61  ;;  %v1535_v13 = vcombine.high %v1531_v4, %v1531_v4  ;;  %1622 = vst.msk [vmem:[#allocation2 + $0x6b] sm:$0x1] %vm735_vm4, %v1531_v4  ;;  %v1857_v14 = vrot.slane %v1841_v5, %v6338_v61  ;;  %v5343_v29 = vpop.f32.mrb[29].mxu1 }
 0x30a   : > { %1623 = vst.msk [vmem:[#allocation2 + $0x73] sm:$0x1] %vm735_vm4, %v1533_v1  ;;  %v1550_v15 = vrot.slane %v1536_v6, %v6338_v61  ;;  %1620 = vst.msk [vmem:[#allocation2 + $0x5b] sm:$0x1] %vm735_vm4, %v1534_v7  ;;  %v1864_v18 = vrot.slane %v1842_v8, %v6338_v61  ;;  %v1872_v19 = vcombine.high %v1850_v9, %v1850_v9 }
 0x30b   : > { %1916 = vst.msk [vmem:[#allocation2 + $0x84] sm:$0x1] %vm735_vm4, %v1850_v9  ;;  %v1551_v20 = vcombine.high %v1543_v10, %v1543_v10  ;;  %v1559_v21 = vrot.slane %v1543_v10, %v6338_v61  ;;  %1624 = vst.msk [vmem:[#allocation2 + $0x7b] sm:$0x1] %vm735_vm4, %v1535_v13  ;;  %v2311_v26 = vcombine.high %v6485_v34, %v6485_v34 }
 0x30c   : > { %1920 = vst.msk [vmem:[#allocation2 + $0xa4] sm:$0x1] %vm735_vm4, %v1857_v14  ;;  %v1566_v22 = vrot.slane %v1550_v15, %v6338_v61  ;;  %v1874_v23 = vcombine.high %v1864_v18, %v1864_v18  ;;  %1917 = vst.msk [vmem:[#allocation2 + $0x8c] sm:$0x1] %vm735_vm4, %v1864_v18  ;;  %v2318_v28 = vrot.slane %v6485_v34, %v6338_v61  ;;  %v6572_v42 = vpop.f32.mrb[30].mxu1 }
 0x30d   : > { %1918 = vst.msk [vmem:[#allocation2 + $0x94] sm:$0x1] %vm735_vm4, %v1872_v19  ;;  %v1573_v24 = vrot.slane %v1551_v20, %v6338_v61  ;;  %v1581_v25 = vcombine.high %v1559_v21, %v1559_v21  ;;  %1625 = vst.msk [vmem:[#allocation2 + $0x83] sm:$0x1] %vm735_vm4, %v1559_v21  ;;  %v2325_v31 = vrot.slane %v2311_v26, %v6338_v61  ;;  %v5359_v47 = vpop.f32.mrb[31].mxu1 }
 0x30e   : > { %1629 = vst.msk [vmem:[#allocation2 + $0xa3] sm:$0x1] %vm735_vm4, %v1566_v22  ;;  %1919 = vst.msk [vmem:[#allocation2 + $0x9c] sm:$0x1] %vm735_vm4, %v1874_v23  ;;  %v2020_v32 = vcombine.high %v6504_v54, %v6504_v54  ;;  %v2027_v33 = vrot.slane %v6504_v54, %v6338_v61  ;;  %v2326_v35 = vcombine.high %v2318_v28, %v2318_v28 }
 0x30f   : > { %v1583_v30 = vcombine.high %v1573_v24, %v1573_v24  ;;  %1626 = vst.msk [vmem:[#allocation2 + $0x8b] sm:$0x1] %vm735_vm4, %v1573_v24  ;;  %1627 = vst.msk [vmem:[#allocation2 + $0x93] sm:$0x1] %vm735_vm4, %v1581_v25  ;;  %v2334_v36 = vrot.slane %v2318_v28, %v6338_v61  ;;  %v2360_v34 = vcombine.high %v6506_v55, %v6506_v55 }
 0x310   : > { %v2327_v37 = vcombine.high %v2325_v31, %v2325_v31  ;;  %v2341_v38 = vrot.slane %v2325_v31, %v6338_v61  ;;  %v2034_v40 = vrot.slane %v2020_v32, %v6338_v61  ;;  %v2035_v41 = vcombine.high %v2027_v33, %v2027_v33  ;;  %v6591_v60 = vpop.f32.mrb[32].mxu1 }
 0x311   : > { %1628 = vst.msk [vmem:[#allocation2 + $0x9b] sm:$0x1] %vm735_vm4, %v1583_v30  ;;  %v2348_v43 = vrot.slane %v2326_v35, %v6338_v61  ;;  %v2356_v44 = vcombine.high %v2334_v36, %v2334_v36  ;;  %2482 = vst.msk [vmem:[#allocation2 + $0x6] sm:$0x1] %vm735_vm4, %v2334_v36  ;;  %v2043_v45 = vrot.slane %v2027_v33, %v6338_v61  ;;  %v5362_v3 = vpop.f32.mrb[33].mxu1 }
 0x312   : > { %v2367_v46 = vrot.slane %v6506_v55, %v6338_v61  ;;  %v2355_v48 = vrot.slane %v2327_v37, %v6338_v61  ;;  %v2357_v49 = vcombine.high %v2341_v38, %v2341_v38  ;;  %2486 = vst.msk [vmem:[#allocation2 + $0x26] sm:$0x1] %vm735_vm4, %v2341_v38  ;;  %v2036_v50 = vcombine.high %v2034_v40, %v2034_v40 }
 0x313   : > { %v2050_v51 = vrot.slane %v2034_v40, %v6338_v61  ;;  %v2358_v52 = vcombine.high %v2348_v43, %v2348_v43  ;;  %2483 = vst.msk [vmem:[#allocation2 + $0xe] sm:$0x1] %vm735_vm4, %v2348_v43  ;;  %2484 = vst.msk [vmem:[#allocation2 + $0x16] sm:$0x1] %vm735_vm4, %v2356_v44  ;;  %v2057_v53 = vrot.slane %v2035_v41, %v6338_v61 }
 0x314   : > { %v2065_v54 = vcombine.high %v2043_v45, %v2043_v45  ;;  %2191 = vst.msk [vmem:[#allocation2 + $0x5] sm:$0x1] %vm735_vm4, %v2043_v45  ;;  %v2374_v55 = vrot.slane %v2360_v34, %v6338_v61  ;;  %v2359_v56 = vcombine.high %v2355_v48, %v2355_v48  ;;  %2487 = vst.msk [vmem:[#allocation2 + $0x2e] sm:$0x1] %vm735_vm4, %v2355_v48  ;;  %v6616_v16 = vpop.f32.mrb[34].mxu1 }
 0x315   : > { %2488 = vst.msk [vmem:[#allocation2 + $0x36] sm:$0x1] %vm735_vm4, %v2357_v49  ;;  %v2064_v57 = vrot.slane %v2036_v50, %v6338_v61  ;;  %v2066_v58 = vcombine.high %v2050_v51, %v2050_v51  ;;  %2195 = vst.msk [vmem:[#allocation2 + $0x25] sm:$0x1] %vm735_vm4, %v2050_v51  ;;  %v2375_v59 = vcombine.high %v2367_v46, %v2367_v46  ;;  %v5365_v21 = vpop.f32.mrb[35].mxu1 }
 0x316   : > { %2485 = vst.msk [vmem:[#allocation2 + $0x1e] sm:$0x1] %vm735_vm4, %v2358_v52  ;;  %v2067_v62 = vcombine.high %v2057_v53, %v2057_v53  ;;  %2192 = vst.msk [vmem:[#allocation2 + $0xd] sm:$0x1] %vm735_vm4, %v2057_v53  ;;  %v2376_v63 = vcombine.high %v2374_v55, %v2374_v55  ;;  %v2383_v0 = vrot.slane %v2367_v46, %v6338_v61  ;;  %v6708_v21 = vld [vmem:[#allocation11 + $0x10] sm:$0xff] }
 0x317   : > { %2193 = vst.msk [vmem:[#allocation2 + $0x15] sm:$0x1] %vm735_vm4, %v2065_v54  ;;  %v2390_v2 = vrot.slane %v2374_v55, %v6338_v61  ;;  %2489 = vst.msk [vmem:[#allocation2 + $0x3e] sm:$0x1] %vm735_vm4, %v2359_v56  ;;  %v2068_v4 = vcombine.high %v2064_v57, %v2064_v57  ;;  %v2397_v1 = vrot.slane %v2375_v59, %v6338_v61 }
 0x318   : > { %2196 = vst.msk [vmem:[#allocation2 + $0x2d] sm:$0x1] %vm735_vm4, %v2064_v57  ;;  %2197 = vst.msk [vmem:[#allocation2 + $0x35] sm:$0x1] %vm735_vm4, %v2066_v58  ;;  %v2069_v5 = vcombine.high %v6532_v11, %v6532_v11  ;;  %v2076_v6 = vrot.slane %v6532_v11, %v6338_v61  ;;  %v2404_v7 = vrot.slane %v2376_v63, %v6338_v61 }
 0x319   : > { %2194 = vst.msk [vmem:[#allocation2 + $0x1d] sm:$0x1] %vm735_vm4, %v2067_v62  ;;  %v2405_v8 = vcombine.high %v2383_v0, %v2383_v0  ;;  %v2406_v9 = vcombine.high %v2390_v2, %v2390_v2  ;;  %2490 = vst.msk [vmem:[#allocation2 + $0x46] sm:$0x1] %vm735_vm4, %v2383_v0  ;;  %v2409_v10 = vcombine.high %v6534_v12, %v6534_v12 }
 0x31a   : > { %2494 = vst.msk [vmem:[#allocation2 + $0x66] sm:$0x1] %vm735_vm4, %v2390_v2  ;;  %2198 = vst.msk [vmem:[#allocation2 + $0x3d] sm:$0x1] %vm735_vm4, %v2068_v4  ;;  %v2407_v13 = vcombine.high %v2397_v1, %v2397_v1  ;;  %v2083_v11 = vrot.slane %v2069_v5, %v6338_v61  ;;  %v2084_v14 = vcombine.high %v2076_v6, %v2076_v6 }
 0x31b   : > { %2491 = vst.msk [vmem:[#allocation2 + $0x4e] sm:$0x1] %vm735_vm4, %v2397_v1  ;;  %v2092_v15 = vrot.slane %v2076_v6, %v6338_v61  ;;  %v2408_v17 = vcombine.high %v2404_v7, %v2404_v7  ;;  %2492 = vst.msk [vmem:[#allocation2 + $0x56] sm:$0x1] %vm735_vm4, %v2405_v8  ;;  %v2416_v18 = vrot.slane %v6534_v12, %v6338_v61 }
 0x31c   : > { %2495 = vst.msk [vmem:[#allocation2 + $0x6e] sm:$0x1] %vm735_vm4, %v2404_v7  ;;  %2496 = vst.msk [vmem:[#allocation2 + $0x76] sm:$0x1] %vm735_vm4, %v2406_v9  ;;  %v2423_v19 = vrot.slane %v2409_v10, %v6338_v61  ;;  %v2118_v20 = vcombine.high %v6553_v27, %v6553_v27  ;;  %v2085_v22 = vcombine.high %v2083_v11, %v2083_v11 }
 0x31d   : > { %2493 = vst.msk [vmem:[#allocation2 + $0x5e] sm:$0x1] %vm735_vm4, %v2407_v13  ;;  %v2099_v23 = vrot.slane %v2083_v11, %v6338_v61  ;;  %v2106_v24 = vrot.slane %v2084_v14, %v6338_v61  ;;  %v2114_v25 = vcombine.high %v2092_v15, %v2092_v15  ;;  %2199 = vst.msk [vmem:[#allocation2 + $0x45] sm:$0x1] %vm735_vm4, %v2092_v15  ;;  %v6698_v15 = vld [vmem:[#allocation11 + $0x8] sm:$0xff] }
 0x31e   : > { %2497 = vst.msk [vmem:[#allocation2 + $0x7e] sm:$0x1] %vm735_vm4, %v2408_v17  ;;  %v2424_v26 = vcombine.high %v2416_v18, %v2416_v18  ;;  %v2432_v12 = vrot.slane %v2416_v18, %v6338_v61  ;;  %v2439_v28 = vrot.slane %v2423_v19, %v6338_v61  ;;  %v2113_v29 = vrot.slane %v2085_v22, %v6338_v61 }
 0x31f   : > { %v2115_v30 = vcombine.high %v2099_v23, %v2099_v23  ;;  %v2116_v31 = vcombine.high %v2106_v24, %v2106_v24  ;;  %2200 = vst.msk [vmem:[#allocation2 + $0x4d] sm:$0x1] %vm735_vm4, %v2106_v24  ;;  %2201 = vst.msk [vmem:[#allocation2 + $0x55] sm:$0x1] %vm735_vm4, %v2114_v25  ;;  %v2125_v32 = vrot.slane %v6553_v27, %v6338_v61  ;;  %v6725_v25 = vld [vmem:[#allocation11] sm:$0xff] }
 0x320   : > { %2203 = vst.msk [vmem:[#allocation2 + $0x65] sm:$0x1] %vm735_vm4, %v2099_v23  ;;  %v2446_v33 = vrot.slane %v2424_v26, %v6338_v61  ;;  %v2454_v35 = vcombine.high %v2432_v12, %v2432_v12  ;;  %2498 = vst.msk [vmem:[#allocation2 + $0x86] sm:$0x1] %vm735_vm4, %v2432_v12  ;;  %v2117_v36 = vcombine.high %v2113_v29, %v2113_v29  ;;  %v6713_v23 = vld [vmem:[#allocation11 + $0x18] sm:$0xff] }
 0x321   : > { %2502 = vst.msk [vmem:[#allocation2 + $0xa6] sm:$0x1] %vm735_vm4, %v2439_v28  ;;  %2202 = vst.msk [vmem:[#allocation2 + $0x5d] sm:$0x1] %vm735_vm4, %v2116_v31  ;;  %v2132_v34 = vrot.slane %v2118_v20, %v6338_v61  ;;  %v2133_v37 = vcombine.high %v2125_v32, %v2125_v32  ;;  %v2141_v38 = vrot.slane %v2125_v32, %v6338_v61 }
 0x322   : > { %2204 = vst.msk [vmem:[#allocation2 + $0x6d] sm:$0x1] %vm735_vm4, %v2113_v29  ;;  %2205 = vst.msk [vmem:[#allocation2 + $0x75] sm:$0x1] %vm735_vm4, %v2115_v30  ;;  %v2456_v27 = vcombine.high %v2446_v33, %v2446_v33  ;;  %v2602_v40 = vcombine.high %v6572_v42, %v6572_v42  ;;  %v2609_v41 = vrot.slane %v6572_v42, %v6338_v61 }
 0x323   : > { %2499 = vst.msk [vmem:[#allocation2 + $0x8e] sm:$0x1] %vm735_vm4, %v2446_v33  ;;  %2500 = vst.msk [vmem:[#allocation2 + $0x96] sm:$0x1] %vm735_vm4, %v2454_v35  ;;  %v2148_v43 = vrot.slane %v2132_v34, %v6338_v61  ;;  %v2155_v44 = vrot.slane %v2133_v37, %v6338_v61  ;;  %v2163_v45 = vcombine.high %v2141_v38, %v2141_v38 }
 0x324   : > { %2206 = vst.msk [vmem:[#allocation2 + $0x7d] sm:$0x1] %vm735_vm4, %v2117_v36  ;;  %2207 = vst.msk [vmem:[#allocation2 + $0x85] sm:$0x1] %vm735_vm4, %v2141_v38  ;;  %v2616_v46 = vrot.slane %v2602_v40, %v6338_v61  ;;  %v2617_v47 = vcombine.high %v2609_v41, %v2609_v41  ;;  %v2625_v48 = vrot.slane %v2609_v41, %v6338_v61 }
 0x325   : > { %2501 = vst.msk [vmem:[#allocation2 + $0x9e] sm:$0x1] %vm735_vm4, %v2456_v27  ;;  %v2651_v49 = vcombine.high %v6591_v60, %v6591_v60  ;;  %v2165_v42 = vcombine.high %v2155_v44, %v2155_v44  ;;  %2208 = vst.msk [vmem:[#allocation2 + $0x8d] sm:$0x1] %vm735_vm4, %v2155_v44  ;;  %v2658_v50 = vrot.slane %v6591_v60, %v6338_v61 }
 0x326   : > { %2209 = vst.msk [vmem:[#allocation2 + $0x95] sm:$0x1] %vm735_vm4, %v2163_v45  ;;  %2211 = vst.msk [vmem:[#allocation2 + $0xa5] sm:$0x1] %vm735_vm4, %v2148_v43  ;;  %v2618_v51 = vcombine.high %v2616_v46, %v2616_v46  ;;  %v2632_v52 = vrot.slane %v2616_v46, %v6338_v61  ;;  %v2639_v53 = vrot.slane %v2617_v47, %v6338_v61 }
 0x327   : > { %v2647_v54 = vcombine.high %v2625_v48, %v2625_v48  ;;  %2773 = vst.msk [vmem:[#allocation2 + $0x7] sm:$0x1] %vm735_vm4, %v2625_v48  ;;  %2210 = vst.msk [vmem:[#allocation2 + $0x9d] sm:$0x1] %vm735_vm4, %v2165_v42  ;;  %v2665_v55 = vrot.slane %v2651_v49, %v6338_v61  ;;  %v2666_v56 = vcombine.high %v2658_v50, %v2658_v50 }
 0x328   : > { %v2674_v57 = vrot.slane %v2658_v50, %v6338_v61  ;;  %v2646_v58 = vrot.slane %v2618_v51, %v6338_v61  ;;  %v2648_v59 = vcombine.high %v2632_v52, %v2632_v52  ;;  %v2649_v62 = vcombine.high %v2639_v53, %v2639_v53  ;;  %2774 = vst.msk [vmem:[#allocation2 + $0xf] sm:$0x1] %vm735_vm4, %v2639_v53 }
 0x329   : > { %2775 = vst.msk [vmem:[#allocation2 + $0x17] sm:$0x1] %vm735_vm4, %v2647_v54  ;;  %2777 = vst.msk [vmem:[#allocation2 + $0x27] sm:$0x1] %vm735_vm4, %v2632_v52  ;;  %v2700_v60 = vcombine.high %v6616_v16, %v6616_v16  ;;  %v2667_v63 = vcombine.high %v2665_v55, %v2665_v55  ;;  %v2681_v0 = vrot.slane %v2665_v55, %v6338_v61 }
 0x32a   : > { %v2688_v2 = vrot.slane %v2666_v56, %v6338_v61  ;;  %v2696_v3 = vcombine.high %v2674_v57, %v2674_v57  ;;  %2781 = vst.msk [vmem:[#allocation2 + $0x47] sm:$0x1] %vm735_vm4, %v2674_v57  ;;  %v2650_v4 = vcombine.high %v2646_v58, %v2646_v58  ;;  %2776 = vst.msk [vmem:[#allocation2 + $0x1f] sm:$0x1] %vm735_vm4, %v2649_v62 }
 0x32b   : > { %2778 = vst.msk [vmem:[#allocation2 + $0x2f] sm:$0x1] %vm735_vm4, %v2646_v58  ;;  %2779 = vst.msk [vmem:[#allocation2 + $0x37] sm:$0x1] %vm735_vm4, %v2648_v59  ;;  %v2707_v1 = vrot.slane %v6616_v16, %v6338_v61  ;;  %v2714_v5 = vrot.slane %v2700_v60, %v6338_v61  ;;  %v2695_v6 = vrot.slane %v2667_v63, %v6338_v61 }
 0x32c   : > { %v2697_v7 = vcombine.high %v2681_v0, %v2681_v0  ;;  %v2698_v8 = vcombine.high %v2688_v2, %v2688_v2  ;;  %2782 = vst.msk [vmem:[#allocation2 + $0x4f] sm:$0x1] %vm735_vm4, %v2688_v2  ;;  %2783 = vst.msk [vmem:[#allocation2 + $0x57] sm:$0x1] %vm735_vm4, %v2696_v3 }
 0x32d   : > { %2785 = vst.msk [vmem:[#allocation2 + $0x67] sm:$0x1] %vm735_vm4, %v2681_v0  ;;  %2780 = vst.msk [vmem:[#allocation2 + $0x3f] sm:$0x1] %vm735_vm4, %v2650_v4  ;;  %v2715_v9 = vcombine.high %v2707_v1, %v2707_v1  ;;  %v2723_v10 = vrot.slane %v2707_v1, %v6338_v61  ;;  %v2730_v13 = vrot.slane %v2714_v5, %v6338_v61 }
 0x32e   : > { %v2699_v11 = vcombine.high %v2695_v6, %v2695_v6  ;;  %2784 = vst.msk [vmem:[#allocation2 + $0x5f] sm:$0x1] %vm735_vm4, %v2698_v8  ;;  %2786 = vst.msk [vmem:[#allocation2 + $0x6f] sm:$0x1] %vm735_vm4, %v2695_v6  ;;  %v2801_v14 = vld [vmem:[#allocation2] sm:$0xff] }
 0x32f   : > { %2787 = vst.msk [vmem:[#allocation2 + $0x77] sm:$0x1] %vm735_vm4, %v2697_v7  ;;  %v2737_v16 = vrot.slane %v2715_v9, %v6338_v61  ;;  %v2745_v17 = vcombine.high %v2723_v10, %v2723_v10  ;;  %2789 = vst.msk [vmem:[#allocation2 + $0x87] sm:$0x1] %vm735_vm4, %v2723_v10  ;;  %5366 = vmatprep.subr.mxu0 %v2801_v14  ;;  %v2906_v18 = vld [vmem:[#allocation2 + $0x8] sm:$0xff] }
 0x330   : > { %2793 = vst.msk [vmem:[#allocation2 + $0xa7] sm:$0x1] %vm735_vm4, %v2730_v13  ;;  %2788 = vst.msk [vmem:[#allocation2 + $0x7f] sm:$0x1] %vm735_vm4, %v2699_v11  ;;  %5367 = vmatpush3.msra.mxu0 %v2801_v14  ;;  %v2998_v19 = vld [vmem:[#allocation2 + $0x10] sm:$0xff]  ;;  %5374 = vmatprep.subr.mxu1 %v2906_v18  ;;  %v3182_v22 = vld [vmem:[#allocation2 + $0x20] sm:$0xff] }
 0x331   : > { %v2747_v20 = vcombine.high %v2737_v16, %v2737_v16  ;;  %2790 = vst.msk [vmem:[#allocation2 + $0x8f] sm:$0x1] %vm735_vm4, %v2737_v16  ;;  %2791 = vst.msk [vmem:[#allocation2 + $0x97] sm:$0x1] %vm735_vm4, %v2745_v17  ;;  %5369 = vmatmul.mubr.msk.f32.vlgmr.msra.gmra.mrb[18].mxu0 %vm471_vm3, %v6698_v15  ;;  %5382 = vmatprep.subr.mxu0 %v2998_v19  ;;  %v3090_v61 = vld [vmem:[#allocation2 + $0x18] sm:$0xff]  ;;  %v3550_v12 = vld [vmem:[#allocation2 + $0x40] sm:$0xff] }
 0x332   : > { %5375 = vmatpush3.msra.mxu1 %v2906_v18  ;;  %5383 = vmatpush3.msra.mxu0 %v2998_v19  ;;  %v3274_v24 = vld [vmem:[#allocation2 + $0x28] sm:$0xff]  ;;  %v3366_v26 = vld [vmem:[#allocation2 + $0x30] sm:$0xff] }
 0x333   : > { %2792 = vst.msk [vmem:[#allocation2 + $0x9f] sm:$0x1] %vm735_vm4, %v2747_v20  ;;  %5377 = vmatmul.mubr.msk.f32.vlgmr.msra.gmra.mrb[36].mxu1 %vm471_vm3, %v6698_v15  ;;  %5390 = vmatprep.subr.mxu1 %v3090_v61  ;;  %v3642_v28 = vld [vmem:[#allocation2 + $0x48] sm:$0xff]  ;;  %v3734_v29 = vld [vmem:[#allocation2 + $0x50] sm:$0xff] }
 0x334   : > { %5398 = vmatprep.subr.mxu0 %v3182_v22  ;;  %5371 = vmatprep.mubr.msk.f32.mxu0 %vm471_vm3, %v6708_v21  ;;  %v3918_v31 = vld [vmem:[#allocation2 + $0x60] sm:$0xff] }
 0x335   : > { %5391 = vmatpush3.msra.mxu1 %v3090_v61  ;;  %5372 = vmatmul.mubr.msk.f32.gmra.mrb[20].mxu0 %vm471_vm3, %v6713_v23  ;;  %v3826_v30 = vld [vmem:[#allocation2 + $0x58] sm:$0xff]  ;;  %v4010_v32 = vld [vmem:[#allocation2 + $0x68] sm:$0xff] }
 0x336   : > { %5406 = vmatprep.subr.mxu1 %v3274_v24  ;;  %5379 = vmatprep.mubr.msk.f32.mxu1 %vm471_vm3, %v6708_v21  ;;  %v4102_v33 = vld [vmem:[#allocation2 + $0x70] sm:$0xff]  ;;  %v4286_v36 = vld [vmem:[#allocation2 + $0x80] sm:$0xff] }
 0x337   : > { %5384 = vmatprep.mubr.msk.f32.mxu0 %vm471_vm3, %v6378_v39  ;;  %5380 = vmatmul.mubr.msk.f32.gmra.mrb[38].mxu1 %vm471_vm3, %v6713_v23  ;;  %v3458_v39 = vld [vmem:[#allocation2 + $0x38] sm:$0xff]  ;;  %v4654_v27 = vld [vmem:[#allocation2 + $0xa0] sm:$0xff] }
 0x338   : > { %5392 = vmatprep.mubr.msk.f32.mxu1 %vm471_vm3, %v6725_v25  ;;  %v4194_v35 = vld [vmem:[#allocation2 + $0x78] sm:$0xff]  ;;  %v4378_v34 = vld [vmem:[#allocation2 + $0x88] sm:$0xff]  ;;  %v4470_v37 = vld [vmem:[#allocation2 + $0x90] sm:$0xff] }
 0x339   : > { %5385 = vmatmul.mubr.msk.f32.vlgmr.msra.gmra.mrb[22].mxu0 %vm471_vm3, %v6698_v15 }
 0x33a   : > { %5399 = vmatpush3.msra.mxu0 %v3182_v22  ;;  %5387 = vmatprep.mubr.msk.f32.mxu0 %vm471_vm3, %v6708_v21  ;;  %v4562_v38 = vld [vmem:[#allocation2 + $0x98] sm:$0xff] }
 0x33b   : > { %5414 = vmatprep.subr.mxu0 %v3366_v26  ;;  %5393 = vmatmul.mubr.msk.f32.vlgmr.msra.gmra.mrb[40].mxu1 %vm471_vm3, %v6698_v15 }
 0x33c   : > { %5407 = vmatpush3.msra.mxu1 %v3274_v24  ;;  %5395 = vmatprep.mubr.msk.f32.mxu1 %vm471_vm3, %v6708_v21 }
 0x33d   : > { %5422 = vmatprep.subr.mxu1 %v3458_v39  ;;  %5388 = vmatmul.mubr.msk.f32.gmra.mrb[24].mxu0 %vm471_vm3, %v6713_v23 }
 0x33e   : > { %5400 = vmatprep.mubr.msk.f32.mxu0 %vm471_vm3, %v6725_v25 }
 0x33f   : > { %5396 = vmatmul.mubr.msk.f32.gmra.mrb[42].mxu1 %vm471_vm3, %v6713_v23 }
 0x340   : > { %5408 = vmatprep.mubr.msk.f32.mxu1 %vm471_vm3, %v6725_v25 }
 0x341   : > { %5401 = vmatmul.mubr.msk.f32.vlgmr.msra.gmra.mrb[26].mxu0 %vm471_vm3, %v6698_v15 }
 0x342   : > { %5415 = vmatpush3.msra.mxu0 %v3366_v26  ;;  %5403 = vmatprep.mubr.msk.f32.mxu0 %vm471_vm3, %v6708_v21 }
 0x343   : > { %5430 = vmatprep.subr.mxu0 %v3550_v12  ;;  %5409 = vmatmul.mubr.msk.f32.vlgmr.msra.gmra.mrb[44].mxu1 %vm471_vm3, %v6698_v15 }
 0x344   : > { %5423 = vmatpush3.msra.mxu1 %v3458_v39  ;;  %5411 = vmatprep.mubr.msk.f32.mxu1 %vm471_vm3, %v6708_v21 }
 0x345   : > { %5438 = vmatprep.subr.mxu1 %v3642_v28  ;;  %5404 = vmatmul.mubr.msk.f32.gmra.mrb[28].mxu0 %vm471_vm3, %v6713_v23 }
 0x346   : > { %5416 = vmatprep.mubr.msk.f32.mxu0 %vm471_vm3, %v6725_v25 }
 0x347   : > { %5412 = vmatmul.mubr.msk.f32.gmra.mrb[46].mxu1 %vm471_vm3, %v6713_v23 }
 0x348   : > { %5424 = vmatprep.mubr.msk.f32.mxu1 %vm471_vm3, %v6725_v25 }
 0x349   : > { %5417 = vmatmul.mubr.msk.f32.vlgmr.msra.gmra.mrb[30].mxu0 %vm471_vm3, %v6698_v15 }
 0x34a   : > { %5431 = vmatpush3.msra.mxu0 %v3550_v12  ;;  %5419 = vmatprep.mubr.msk.f32.mxu0 %vm471_vm3, %v6708_v21 }
 0x34b   : > { %5446 = vmatprep.subr.mxu0 %v3734_v29  ;;  %5425 = vmatmul.mubr.msk.f32.vlgmr.msra.gmra.mrb[48].mxu1 %vm471_vm3, %v6698_v15 }
 0x34c   : > { %5439 = vmatpush3.msra.mxu1 %v3642_v28  ;;  %5427 = vmatprep.mubr.msk.f32.mxu1 %vm471_vm3, %v6708_v21 }
 0x34d   : > { %5454 = vmatprep.subr.mxu1 %v3826_v30  ;;  %5420 = vmatmul.mubr.msk.f32.gmra.mrb[32].mxu0 %vm471_vm3, %v6713_v23 }
 0x34e   : > { %5432 = vmatprep.mubr.msk.f32.mxu0 %vm471_vm3, %v6725_v25 }
 0x34f   : > { %5428 = vmatmul.mubr.msk.f32.gmra.mrb[50].mxu1 %vm471_vm3, %v6713_v23 }
 0x350   : > { %5440 = vmatprep.mubr.msk.f32.mxu1 %vm471_vm3, %v6725_v25 }
 0x351   : > { %5433 = vmatmul.mubr.msk.f32.vlgmr.msra.gmra.mrb[34].mxu0 %vm471_vm3, %v6698_v15 }
 0x352   : > { %5447 = vmatpush3.msra.mxu0 %v3734_v29  ;;  %5435 = vmatprep.mubr.msk.f32.mxu0 %vm471_vm3, %v6708_v21 }
 0x353   : > { %5462 = vmatprep.subr.mxu0 %v3918_v31  ;;  %5441 = vmatmul.mubr.msk.f32.vlgmr.msra.gmra.mrb[52].mxu1 %vm471_vm3, %v6698_v15 }
 0x354   : > { %5455 = vmatpush3.msra.mxu1 %v3826_v30  ;;  %5443 = vmatprep.mubr.msk.f32.mxu1 %vm471_vm3, %v6708_v21 }
 0x355   : > { %5470 = vmatprep.subr.mxu1 %v4010_v32  ;;  %5436 = vmatmul.mubr.msk.f32.gmra.mrb[36].mxu0 %vm471_vm3, %v6713_v23 }
 0x356   : > { %5448 = vmatprep.mubr.msk.f32.mxu0 %vm471_vm3, %v6725_v25 }
 0x357   : > { %5444 = vmatmul.mubr.msk.f32.gmra.mrb[54].mxu1 %vm471_vm3, %v6713_v23 }
 0x358   : > { %5456 = vmatprep.mubr.msk.f32.mxu1 %vm471_vm3, %v6725_v25 }
 0x359   : > { %5449 = vmatmul.mubr.msk.f32.vlgmr.msra.gmra.mrb[38].mxu0 %vm471_vm3, %v6698_v15 }
 0x35a   : > { %5463 = vmatpush3.msra.mxu0 %v3918_v31  ;;  %5451 = vmatprep.mubr.msk.f32.mxu0 %vm471_vm3, %v6708_v21 }
 0x35b   : > { %5478 = vmatprep.subr.mxu0 %v4102_v33  ;;  %5457 = vmatmul.mubr.msk.f32.vlgmr.msra.gmra.mrb[56].mxu1 %vm471_vm3, %v6698_v15 }
 0x35c   : > { %5471 = vmatpush3.msra.mxu1 %v4010_v32  ;;  %5459 = vmatprep.mubr.msk.f32.mxu1 %vm471_vm3, %v6708_v21 }
 0x35d   : > { %5486 = vmatprep.subr.mxu1 %v4194_v35  ;;  %5452 = vmatmul.mubr.msk.f32.gmra.mrb[40].mxu0 %vm471_vm3, %v6713_v23 }
 0x35e   : > { %5464 = vmatprep.mubr.msk.f32.mxu0 %vm471_vm3, %v6725_v25 }
 0x35f   : > { %5460 = vmatmul.mubr.msk.f32.gmra.mrb[58].mxu1 %vm471_vm3, %v6713_v23 }
 0x360   : > { %5472 = vmatprep.mubr.msk.f32.mxu1 %vm471_vm3, %v6725_v25 }
 0x361   : > { %5465 = vmatmul.mubr.msk.f32.vlgmr.msra.gmra.mrb[42].mxu0 %vm471_vm3, %v6698_v15 }
 0x362   : > { %5479 = vmatpush3.msra.mxu0 %v4102_v33  ;;  %5467 = vmatprep.mubr.msk.f32.mxu0 %vm471_vm3, %v6708_v21 }
 0x363   : > { %5494 = vmatprep.subr.mxu0 %v4286_v36  ;;  %5473 = vmatmul.mubr.msk.f32.vlgmr.msra.gmra.mrb[60].mxu1 %vm471_vm3, %v6698_v15 }
 0x364   : > { %5487 = vmatpush3.msra.mxu1 %v4194_v35  ;;  %5475 = vmatprep.mubr.msk.f32.mxu1 %vm471_vm3, %v6708_v21 }
 0x365   : > { %5502 = vmatprep.subr.mxu1 %v4378_v34  ;;  %5468 = vmatmul.mubr.msk.f32.gmra.mrb[44].mxu0 %vm471_vm3, %v6713_v23 }
 0x366   : > { %5480 = vmatprep.mubr.msk.f32.mxu0 %vm471_vm3, %v6725_v25 }
 0x367   : > { %5476 = vmatmul.mubr.msk.f32.gmra.mrb[62].mxu1 %vm471_vm3, %v6713_v23 }
 0x368   : > { %5488 = vmatprep.mubr.msk.f32.mxu1 %vm471_vm3, %v6725_v25 }
 0x369   : > { %5481 = vmatmul.mubr.msk.f32.vlgmr.msra.gmra.mrb[46].mxu0 %vm471_vm3, %v6698_v15 }
 0x36a   : > { %5495 = vmatpush3.msra.mxu0 %v4286_v36  ;;  %5483 = vmatprep.mubr.msk.f32.mxu0 %vm471_vm3, %v6708_v21 }
 0x36b   : > { %5510 = vmatprep.subr.mxu0 %v4470_v37  ;;  %5489 = vmatmul.mubr.msk.f32.vlgmr.msra.gmra.mrb[64].mxu1 %vm471_vm3, %v6698_v15 }
 0x36c   : > { %5503 = vmatpush3.msra.mxu1 %v4378_v34  ;;  %5491 = vmatprep.mubr.msk.f32.mxu1 %vm471_vm3, %v6708_v21 }
 0x36d   : > { %5518 = vmatprep.subr.mxu1 %v4562_v38  ;;  %5484 = vmatmul.mubr.msk.f32.gmra.mrb[48].mxu0 %vm471_vm3, %v6713_v23 }
 0x36e   : > { %5496 = vmatprep.mubr.msk.f32.mxu0 %vm471_vm3, %v6725_v25 }
 0x36f   : > { %5492 = vmatmul.mubr.msk.f32.gmra.mrb[66].mxu1 %vm471_vm3, %v6713_v23 }
 0x370   : > { %5504 = vmatprep.mubr.msk.f32.mxu1 %vm471_vm3, %v6725_v25 }
 0x371   : > { %5497 = vmatmul.mubr.msk.f32.vlgmr.msra.gmra.mrb[50].mxu0 %vm471_vm3, %v6698_v15 }
 0x372   : > { %5511 = vmatpush3.msra.mxu0 %v4470_v37  ;;  %5499 = vmatprep.mubr.msk.f32.mxu0 %vm471_vm3, %v6708_v21 }
 0x373   : > { %5526 = vmatprep.subr.mxu0 %v4654_v27  ;;  %5505 = vmatmul.mubr.msk.f32.vlgmr.msra.gmra.mrb[68].mxu1 %vm471_vm3, %v6698_v15 }
 0x374   : > { %5519 = vmatpush3.msra.mxu1 %v4562_v38  ;;  %5507 = vmatprep.mubr.msk.f32.mxu1 %vm471_vm3, %v6708_v21 }
 0x375   : > { %5500 = vmatmul.mubr.msk.f32.gmra.mrb[52].mxu0 %vm471_vm3, %v6713_v23 }
 0x376   : > { %5512 = vmatprep.mubr.msk.f32.mxu0 %vm471_vm3, %v6725_v25 }
 0x377   : > { %5508 = vmatmul.mubr.msk.f32.gmra.mrb[70].mxu1 %vm471_vm3, %v6713_v23 }
 0x378   : > { %5520 = vmatprep.mubr.msk.f32.mxu1 %vm471_vm3, %v6725_v25 }
 0x379   : > { %5513 = vmatmul.mubr.msk.f32.vlgmr.msra.gmra.mrb[54].mxu0 %vm471_vm3, %v6698_v15 }
 0x37a   : > { %5527 = vmatpush3.msra.mxu0 %v4654_v27  ;;  %5515 = vmatprep.mubr.msk.f32.mxu0 %vm471_vm3, %v6708_v21 }
 0x37b   : > { %5521 = vmatmul.mubr.msk.f32.vlgmr.msra.gmra.mrb[72].mxu1 %vm471_vm3, %v6698_v15 }
 0x37c   : > { %5523 = vmatprep.mubr.msk.f32.mxu1 %vm471_vm3, %v6708_v21 }
 0x37d   : > { %5516 = vmatmul.mubr.msk.f32.gmra.mrb[56].mxu0 %vm471_vm3, %v6713_v23 }
 0x37e   : > { %5528 = vmatprep.mubr.msk.f32.mxu0 %vm471_vm3, %v6725_v25 }
 0x37f   : > { %5524 = vmatmul.mubr.msk.f32.gmra.mrb[74].mxu1 %vm471_vm3, %v6713_v23 }
 0x381   : > { %5529 = vmatmul.mubr.msk.f32.vlgmr.msra.gmra.mrb[58].mxu0 %vm471_vm3, %v6698_v15 }
 0x382   : > { %5531 = vmatprep.mubr.msk.f32.mxu0 %vm471_vm3, %v6708_v21 }
 0x385   : > { %5532 = vmatmul.mubr.msk.f32.gmra.mrb[60].mxu0 %vm471_vm3, %v6713_v23 }
 0x404   : > { %v5370_v40 = vpop.f32.mrb[18].mxu0 }
 0x405   : > { %2902 = vst.msk [vmem:[%s6878_s18 + $0x8] sm:$0xff] %vm356_vm1, %v5370_v40  ;;  %v2881_v41 = vpop.f32.mrb[19].mxu0 }
 0x406   : > { %2901 = vst.msk [vmem:[%s6878_s18] sm:$0xff] %vm356_vm1, %v2881_v41  ;;  %v5378_v43 = vpop.f32.mrb[36].mxu1 }
 0x407   : > { %4946 = vst.msk [vmem:[%s6878_s18 + $0x28] sm:$0xff] %vm356_vm1, %v5378_v43  ;;  %v2973_v44 = vpop.f32.mrb[37].mxu1 }
 0x408   : > { %4945 = vst.msk [vmem:[%s6878_s18 + $0x20] sm:$0xff] %vm356_vm1, %v2973_v44  ;;  %v5373_v45 = vpop.f32.mrb[20].mxu0 }
 0x409   : > { %2904 = vst.msk [vmem:[%s6878_s18 + $0x18] sm:$0xff] %vm356_vm1, %v5373_v45  ;;  %v2891_v46 = vpop.f32.mrb[21].mxu0 }
 0x40a   : > { %2903 = vst.msk [vmem:[%s6878_s18 + $0x10] sm:$0xff] %vm356_vm1, %v2891_v46  ;;  %v5381_v47 = vpop.f32.mrb[38].mxu1 }
 0x40b   : > { %4948 = vst.msk [vmem:[%s6878_s18 + $0x38] sm:$0xff] %vm356_vm1, %v5381_v47  ;;  %v2983_v48 = vpop.f32.mrb[39].mxu1 }
 0x40c   : > { %v5386_v49 = vpop.f32.mrb[22].mxu0  ;;  %4947 = vst.msk [vmem:[%s6878_s18 + $0x30] sm:$0xff] %vm356_vm1, %v2983_v48 }
 0x40d   : > { %4954 = vst.msk [vmem:[%s6878_s18 + $0x48] sm:$0xff] %vm356_vm1, %v5386_v49  ;;  %v3065_v42 = vpop.f32.mrb[23].mxu0 }
 0x40e   : > { %4953 = vst.msk [vmem:[%s6878_s18 + $0x40] sm:$0xff] %vm356_vm1, %v3065_v42  ;;  %v5394_v50 = vpop.f32.mrb[40].mxu1 }
 0x40f   : > { %4962 = vst.msk [vmem:[%s6878_s18 + $0x68] sm:$0xff] %vm356_vm1, %v5394_v50  ;;  %v3157_v51 = vpop.f32.mrb[41].mxu1 }
 0x410   : > { %v5389_v52 = vpop.f32.mrb[24].mxu0  ;;  %4961 = vst.msk [vmem:[%s6878_s18 + $0x60] sm:$0xff] %vm356_vm1, %v3157_v51 }
 0x411   : > { %4956 = vst.msk [vmem:[%s6878_s18 + $0x58] sm:$0xff] %vm356_vm1, %v5389_v52  ;;  %v3075_v53 = vpop.f32.mrb[25].mxu0 }
 0x412   : > { %4955 = vst.msk [vmem:[%s6878_s18 + $0x50] sm:$0xff] %vm356_vm1, %v3075_v53  ;;  %v5397_v54 = vpop.f32.mrb[42].mxu1 }
 0x413   : > { %4964 = vst.msk [vmem:[%s6878_s18 + $0x78] sm:$0xff] %vm356_vm1, %v5397_v54  ;;  %v3167_v55 = vpop.f32.mrb[43].mxu1 }
 0x414   : > { %v5402_v56 = vpop.f32.mrb[26].mxu0  ;;  %4963 = vst.msk [vmem:[%s6878_s18 + $0x70] sm:$0xff] %vm356_vm1, %v3167_v55 }
 0x415   : > { %4970 = vst.msk [vmem:[%s6878_s18 + $0x88] sm:$0xff] %vm356_vm1, %v5402_v56  ;;  %v3249_v57 = vpop.f32.mrb[27].mxu0 }
 0x416   : > { %4969 = vst.msk [vmem:[%s6878_s18 + $0x80] sm:$0xff] %vm356_vm1, %v3249_v57  ;;  %v5410_v58 = vpop.f32.mrb[44].mxu1 }
 0x417   : > { %4978 = vst.msk [vmem:[%s6878_s18 + $0xa8] sm:$0xff] %vm356_vm1, %v5410_v58  ;;  %v3341_v59 = vpop.f32.mrb[45].mxu1 }
 0x418   : > { %v5405_v62 = vpop.f32.mrb[28].mxu0  ;;  %4977 = vst.msk [vmem:[%s6878_s18 + $0xa0] sm:$0xff] %vm356_vm1, %v3341_v59 }
 0x419   : > { %4972 = vst.msk [vmem:[%s6878_s18 + $0x98] sm:$0xff] %vm356_vm1, %v5405_v62  ;;  %v3259_v60 = vpop.f32.mrb[29].mxu0 }
 0x41a   : > { %4971 = vst.msk [vmem:[%s6878_s18 + $0x90] sm:$0xff] %vm356_vm1, %v3259_v60  ;;  %v5413_v63 = vpop.f32.mrb[46].mxu1 }
 0x41b   : > { %4980 = vst.msk [vmem:[%s6878_s18 + $0xb8] sm:$0xff] %vm356_vm1, %v5413_v63  ;;  %v3351_v0 = vpop.f32.mrb[47].mxu1 }
 0x41c   : > { %v5418_v2 = vpop.f32.mrb[30].mxu0  ;;  %4979 = vst.msk [vmem:[%s6878_s18 + $0xb0] sm:$0xff] %vm356_vm1, %v3351_v0 }
 0x41d   : > { %4986 = vst.msk [vmem:[%s6878_s18 + $0xc8] sm:$0xff] %vm356_vm1, %v5418_v2  ;;  %v3433_v3 = vpop.f32.mrb[31].mxu0 }
 0x41e   : > { %4985 = vst.msk [vmem:[%s6878_s18 + $0xc0] sm:$0xff] %vm356_vm1, %v3433_v3  ;;  %v5426_v4 = vpop.f32.mrb[48].mxu1 }
 0x41f   : > { %4994 = vst.msk [vmem:[%s6878_s18 + $0xe8] sm:$0xff] %vm356_vm1, %v5426_v4  ;;  %v3525_v1 = vpop.f32.mrb[49].mxu1 }
 0x420   : > { %v5421_v5 = vpop.f32.mrb[32].mxu0  ;;  %4993 = vst.msk [vmem:[%s6878_s18 + $0xe0] sm:$0xff] %vm356_vm1, %v3525_v1 }
 0x421   : > { %4988 = vst.msk [vmem:[%s6878_s18 + $0xd8] sm:$0xff] %vm356_vm1, %v5421_v5  ;;  %v3443_v6 = vpop.f32.mrb[33].mxu0 }
 0x422   : > { %4987 = vst.msk [vmem:[%s6878_s18 + $0xd0] sm:$0xff] %vm356_vm1, %v3443_v6  ;;  %v5429_v7 = vpop.f32.mrb[50].mxu1 }
 0x423   : > { %4996 = vst.msk [vmem:[%s6878_s18 + $0xf8] sm:$0xff] %vm356_vm1, %v5429_v7  ;;  %v3535_v8 = vpop.f32.mrb[51].mxu1 }
 0x424   : > { %v5434_v9 = vpop.f32.mrb[34].mxu0  ;;  %4995 = vst.msk [vmem:[%s6878_s18 + $0xf0] sm:$0xff] %vm356_vm1, %v3535_v8 }
 0x425   : > { %5002 = vst.msk [vmem:[%s6878_s18 + $0x108] sm:$0xff] %vm356_vm1, %v5434_v9  ;;  %v3617_v10 = vpop.f32.mrb[35].mxu0 }
 0x426   : > { %5001 = vst.msk [vmem:[%s6878_s18 + $0x100] sm:$0xff] %vm356_vm1, %v3617_v10  ;;  %v5442_v13 = vpop.f32.mrb[52].mxu1 }
 0x427   : > { %5010 = vst.msk [vmem:[%s6878_s18 + $0x128] sm:$0xff] %vm356_vm1, %v5442_v13  ;;  %v3709_v11 = vpop.f32.mrb[53].mxu1 }
 0x428   : > { %v5437_v14 = vpop.f32.mrb[36].mxu0  ;;  %5009 = vst.msk [vmem:[%s6878_s18 + $0x120] sm:$0xff] %vm356_vm1, %v3709_v11 }
 0x429   : > { %5004 = vst.msk [vmem:[%s6878_s18 + $0x118] sm:$0xff] %vm356_vm1, %v5437_v14  ;;  %v3627_v15 = vpop.f32.mrb[37].mxu0 }
 0x42a   : > { %5003 = vst.msk [vmem:[%s6878_s18 + $0x110] sm:$0xff] %vm356_vm1, %v3627_v15  ;;  %v5445_v16 = vpop.f32.mrb[54].mxu1 }
 0x42b   : > { %5012 = vst.msk [vmem:[%s6878_s18 + $0x138] sm:$0xff] %vm356_vm1, %v5445_v16  ;;  %v3719_v17 = vpop.f32.mrb[55].mxu1 }
 0x42c   : > { %v5450_v18 = vpop.f32.mrb[38].mxu0  ;;  %5011 = vst.msk [vmem:[%s6878_s18 + $0x130] sm:$0xff] %vm356_vm1, %v3719_v17 }
 0x42d   : > { %5018 = vst.msk [vmem:[%s6878_s18 + $0x148] sm:$0xff] %vm356_vm1, %v5450_v18  ;;  %v3801_v19 = vpop.f32.mrb[39].mxu0 }
 0x42e   : > { %5017 = vst.msk [vmem:[%s6878_s18 + $0x140] sm:$0xff] %vm356_vm1, %v3801_v19  ;;  %v5458_v20 = vpop.f32.mrb[56].mxu1 }
 0x42f   : > { %5026 = vst.msk [vmem:[%s6878_s18 + $0x168] sm:$0xff] %vm356_vm1, %v5458_v20  ;;  %v3893_v61 = vpop.f32.mrb[57].mxu1 }
 0x430   : > { %v5453_v21 = vpop.f32.mrb[40].mxu0  ;;  %5025 = vst.msk [vmem:[%s6878_s18 + $0x160] sm:$0xff] %vm356_vm1, %v3893_v61 }
 0x431   : > { %5020 = vst.msk [vmem:[%s6878_s18 + $0x158] sm:$0xff] %vm356_vm1, %v5453_v21  ;;  %v3811_v22 = vpop.f32.mrb[41].mxu0 }
 0x432   : > { %5019 = vst.msk [vmem:[%s6878_s18 + $0x150] sm:$0xff] %vm356_vm1, %v3811_v22  ;;  %v5461_v23 = vpop.f32.mrb[58].mxu1 }
 0x433   : > { %5028 = vst.msk [vmem:[%s6878_s18 + $0x178] sm:$0xff] %vm356_vm1, %v5461_v23  ;;  %v3903_v24 = vpop.f32.mrb[59].mxu1 }
 0x434   : > { %v5466_v25 = vpop.f32.mrb[42].mxu0  ;;  %5027 = vst.msk [vmem:[%s6878_s18 + $0x170] sm:$0xff] %vm356_vm1, %v3903_v24 }
 0x435   : > { %5034 = vst.msk [vmem:[%s6878_s18 + $0x188] sm:$0xff] %vm356_vm1, %v5466_v25  ;;  %v3985_v26 = vpop.f32.mrb[43].mxu0 }
 0x436   : > { %5033 = vst.msk [vmem:[%s6878_s18 + $0x180] sm:$0xff] %vm356_vm1, %v3985_v26  ;;  %v5474_v39 = vpop.f32.mrb[60].mxu1 }
 0x437   : > { %5042 = vst.msk [vmem:[%s6878_s18 + $0x1a8] sm:$0xff] %vm356_vm1, %v5474_v39  ;;  %v4077_v12 = vpop.f32.mrb[61].mxu1 }
 0x438   : > { %v5469_v28 = vpop.f32.mrb[44].mxu0  ;;  %5041 = vst.msk [vmem:[%s6878_s18 + $0x1a0] sm:$0xff] %vm356_vm1, %v4077_v12 }
 0x439   : > { %5036 = vst.msk [vmem:[%s6878_s18 + $0x198] sm:$0xff] %vm356_vm1, %v5469_v28  ;;  %v3995_v29 = vpop.f32.mrb[45].mxu0 }
 0x43a   : > { %5035 = vst.msk [vmem:[%s6878_s18 + $0x190] sm:$0xff] %vm356_vm1, %v3995_v29  ;;  %v5477_v30 = vpop.f32.mrb[62].mxu1 }
 0x43b   : > { %5044 = vst.msk [vmem:[%s6878_s18 + $0x1b8] sm:$0xff] %vm356_vm1, %v5477_v30  ;;  %v4087_v31 = vpop.f32.mrb[63].mxu1 }
 0x43c   : > { %v5482_v32 = vpop.f32.mrb[46].mxu0  ;;  %5043 = vst.msk [vmem:[%s6878_s18 + $0x1b0] sm:$0xff] %vm356_vm1, %v4087_v31 }
 0x43d   : > { %5050 = vst.msk [vmem:[%s6878_s18 + $0x1c8] sm:$0xff] %vm356_vm1, %v5482_v32  ;;  %v4169_v33 = vpop.f32.mrb[47].mxu0 }
 0x43e   : > { %5049 = vst.msk [vmem:[%s6878_s18 + $0x1c0] sm:$0xff] %vm356_vm1, %v4169_v33  ;;  %v5490_v35 = vpop.f32.mrb[64].mxu1 }
 0x43f   : > { %5058 = vst.msk [vmem:[%s6878_s18 + $0x1e8] sm:$0xff] %vm356_vm1, %v5490_v35  ;;  %v4261_v36 = vpop.f32.mrb[65].mxu1 }
 0x440   : > { %v5485_v34 = vpop.f32.mrb[48].mxu0  ;;  %5057 = vst.msk [vmem:[%s6878_s18 + $0x1e0] sm:$0xff] %vm356_vm1, %v4261_v36 }
 0x441   : > { %5052 = vst.msk [vmem:[%s6878_s18 + $0x1d8] sm:$0xff] %vm356_vm1, %v5485_v34  ;;  %v4179_v37 = vpop.f32.mrb[49].mxu0 }
 0x442   : > { %5051 = vst.msk [vmem:[%s6878_s18 + $0x1d0] sm:$0xff] %vm356_vm1, %v4179_v37  ;;  %v5493_v38 = vpop.f32.mrb[66].mxu1 }
 0x443   : > { %5060 = vst.msk [vmem:[%s6878_s18 + $0x1f8] sm:$0xff] %vm356_vm1, %v5493_v38  ;;  %v4271_v27 = vpop.f32.mrb[67].mxu1 }
 0x444   : > { %v5498_v40 = vpop.f32.mrb[50].mxu0  ;;  %5059 = vst.msk [vmem:[%s6878_s18 + $0x1f0] sm:$0xff] %vm356_vm1, %v4271_v27 }
 0x445   : > { %5066 = vst.msk [vmem:[%s6878_s18 + $0x208] sm:$0xff] %vm356_vm1, %v5498_v40  ;;  %v4353_v41 = vpop.f32.mrb[51].mxu0 }
 0x446   : > { %5065 = vst.msk [vmem:[%s6878_s18 + $0x200] sm:$0xff] %vm356_vm1, %v4353_v41  ;;  %v5506_v43 = vpop.f32.mrb[68].mxu1 }
 0x447   : > { %5074 = vst.msk [vmem:[%s6878_s18 + $0x228] sm:$0xff] %vm356_vm1, %v5506_v43  ;;  %v4445_v44 = vpop.f32.mrb[69].mxu1 }
 0x448   : > { %v5501_v45 = vpop.f32.mrb[52].mxu0  ;;  %5073 = vst.msk [vmem:[%s6878_s18 + $0x220] sm:$0xff] %vm356_vm1, %v4445_v44 }
 0x449   : > { %5068 = vst.msk [vmem:[%s6878_s18 + $0x218] sm:$0xff] %vm356_vm1, %v5501_v45  ;;  %v4363_v46 = vpop.f32.mrb[53].mxu0 }
 0x44a   : > { %5067 = vst.msk [vmem:[%s6878_s18 + $0x210] sm:$0xff] %vm356_vm1, %v4363_v46  ;;  %v5509_v47 = vpop.f32.mrb[70].mxu1 }
 0x44b   : > { %5076 = vst.msk [vmem:[%s6878_s18 + $0x238] sm:$0xff] %vm356_vm1, %v5509_v47  ;;  %v4455_v48 = vpop.f32.mrb[71].mxu1 }
 0x44c   : > { %v5514_v49 = vpop.f32.mrb[54].mxu0  ;;  %5075 = vst.msk [vmem:[%s6878_s18 + $0x230] sm:$0xff] %vm356_vm1, %v4455_v48 }
 0x44d   : > { %5082 = vst.msk [vmem:[%s6878_s18 + $0x248] sm:$0xff] %vm356_vm1, %v5514_v49  ;;  %v4537_v42 = vpop.f32.mrb[55].mxu0 }
 0x44e   : > { %5081 = vst.msk [vmem:[%s6878_s18 + $0x240] sm:$0xff] %vm356_vm1, %v4537_v42  ;;  %v5522_v50 = vpop.f32.mrb[72].mxu1 }
 0x44f   : > { %5090 = vst.msk [vmem:[%s6878_s18 + $0x268] sm:$0xff] %vm356_vm1, %v5522_v50  ;;  %v4629_v51 = vpop.f32.mrb[73].mxu1 }
 0x450   : > { %v5517_v52 = vpop.f32.mrb[56].mxu0  ;;  %5089 = vst.msk [vmem:[%s6878_s18 + $0x260] sm:$0xff] %vm356_vm1, %v4629_v51 }
 0x451   : > { %5084 = vst.msk [vmem:[%s6878_s18 + $0x258] sm:$0xff] %vm356_vm1, %v5517_v52  ;;  %v4547_v53 = vpop.f32.mrb[57].mxu0 }
 0x452   : > { %5083 = vst.msk [vmem:[%s6878_s18 + $0x250] sm:$0xff] %vm356_vm1, %v4547_v53  ;;  %v5525_v54 = vpop.f32.mrb[74].mxu1 }
 0x453   : > { %5092 = vst.msk [vmem:[%s6878_s18 + $0x278] sm:$0xff] %vm356_vm1, %v5525_v54  ;;  %v4639_v55 = vpop.f32.mrb[75].mxu1 }
 0x454   : > { %v5530_v56 = vpop.f32.mrb[58].mxu0  ;;  %5091 = vst.msk [vmem:[%s6878_s18 + $0x270] sm:$0xff] %vm356_vm1, %v4639_v55 }
 0x455   : > { %5098 = vst.msk [vmem:[%s6878_s18 + $0x288] sm:$0xff] %vm356_vm1, %v5530_v56  ;;  %v4721_v57 = vpop.f32.mrb[59].mxu0 }
 0x456   : > { %5097 = vst.msk [vmem:[%s6878_s18 + $0x280] sm:$0xff] %vm356_vm1, %v4721_v57 }
 0x458   : > { %v5533_v58 = vpop.f32.mrb[60].mxu0 }
 0x459   : > { %5100 = vst.msk [vmem:[%s6878_s18 + $0x298] sm:$0xff] %vm356_vm1, %v5533_v58  ;;  %v4731_v59 = vpop.f32.mrb[61].mxu0 }
 0x45a   : > { %5099 = vst.msk [vmem:[%s6878_s18 + $0x290] sm:$0xff] %vm356_vm1, %v4731_v59 }
 0x45b   : > { %5829 = shalt.err (!%p5826_p0)
}
 0x45c   : > { %s5830_s30 = scalar_lea.hbm %s7049_s17, 10752  ;;  %s5834_s7 = scalar_lea.hbm %s7109_s5, 21504 }
 0x45d   : > { %p5831_p4 = scmp.ne.s32.totalorder %s7049_s17, %s5830_s30  ;;  %p5835_p12 = scmp.lt.u32.totalorder %s7049_s17, %s7109_s5 }
 0x45e   : > { %p5836_p1 = scmp.lt.u32.totalorder %s5834_s7, %s5830_s30  ;;  %p5838_p8 = scmp.lt.u32.totalorder %s5830_s30, %s7049_s17 }
 0x45f   : > { %p5832_p13 = pnand %p5831_p4, %p6141_p5 }
 0x460   : > { %p5837_p11 = por %p5836_p1, %p5835_p12 }
 0x461   : > { %p5833_p2 = pneg %p5832_p13 }
 0x462   : > { %p5839_p6 = por %p5838_p8, %p5837_p11 }
 0x464   : > { %p5840_p10 = pnand %p5839_p6, %p5833_p2 }
 0x466   : > { %5843 = shalt.err (!%p5840_p10)
}
 0x467   : > { %s5928_s18 = smov 128   ;;  %s5929_s16 = smov 8  }
 0x468   : > { %5570 = dma.vmem_to_hbm [thread:$0]  (%p6141_p5), %s7051_s27, 10752, %s7049_s17, %s4746_s21, %s5928_s18, %s5928_s18, %s5929_s16  }
 0x469 PF: > { %s7133_s15 = sld [smem:[#allocation17_spill]]  ;;  %s7134_s14 = sld [smem:[#allocation18_spill]] }
 0x46a   : > { %p7136_p7 = scmp.ge.s32.totalorder %s5906_s23, 2 }
 0x46f   : > { %s4776_s6 = sand.u32 1, %s7133_s15   ;;  %p7135_p3 = scmp.ne.s32.totalorder %s7134_s14, 0 }
 0x470   : > { %s4777_s9 = scalar_lea.sflag [#allocation5], %s4776_s6 }
 0x471   : > { %p5590_p9 = pnand %p7136_p7, %p7135_p3 }
 0x473   : > { %5881 = dma.done.wait (!%p5590_p9), %s4777_s9, 10752  }
 0x474   : > { %5883 = vsyncadd (!%p5590_p9), %s4777_s9, 4294956544  ;;  %s23_s23 = sadd.s32 1, %s5906_s23   ;;  %s7137_s18 = smov %s5890_s19 }
 0x475   : > { %p20_p0 = scmp.ge.s32.totalorder %s23_s23, 4   ;;  %s7138_s19 = smov %s5894_s20 }
 0x476   : > { %s7139_s20 = smov %s6150_s25  ;;  %s7140_s21 = smov %s5902_s22 }
 0x477   : > { %s7141_s22 = smov %s7143_s24  ;;  %22 = sbr.rel (!%p20_p0) target bundleno = 8 (0x8), region = 146 }
 0x47e   :  { %4782 = vsyncpa [#allocation4], 1 }
 0x47f   :  { %4784 = vsyncpa [#allocation4 + $0x1], 1 }
 0x480   :  { %4785 = vsyncpa [#allocation7], 1 }
 0x481   :  { %4786 = vsyncpa [#allocation10], 1 }
 0x482   :  { %4787 = vsyncpa [#allocation5], 1 }
 0x483   :  { %4789 = vsyncpa [#allocation5 + $0x1], 1 }

</bundles_post_ra>
